<compile_context>
chip_gen: v5e
topology: v5e:2x2
jax: 0.10.0
libtpu: 0.0.40
codegen_flags: <defaults>
</compile_context>

<pallas_src>
import functools

import jax
import jax.numpy as jnp
from jax import lax
from jax.experimental import pallas as pl
from jax.experimental.pallas import tpu as pltpu

BN_EPS = 1e-5


def _round_up(x, m):
    return (x + m - 1) // m * m


def _vmem_limit(per_step_bytes):
    """Scoped-VMEM request: double-buffered pipeline blocks + headroom,
    capped well below v7x's 64 MiB physical VMEM (leave room for DMA)."""
    return int(min(max(2 * per_step_bytes + (4 << 20), 8 << 20), 48 << 20))


# ---------------------------------------------------------------------------
# Kernels
# ---------------------------------------------------------------------------

def _make_conv_stats_kernel(TM, M_valid, Mp):
    """conv-as-GEMM tile + single-pass BatchNorm batch statistics.

    Per grid step j (one M tile):
        y_raw[:, tile_j] = W @ P[:, tile_j] + bias        (one big-K MXU matmul)
        s1 += sum(y), s2 += sum(y*y)                      (masked if M padded)
    Last step: aff = (scale, shift), scale = g * rsqrt(var + eps),
               shift = b - mean * scale (training-mode, biased variance).
    """
    inv_m = 1.0 / float(M_valid)
    padded = Mp != M_valid

    def kernel(p_ref, w_ref, cb_ref, g_ref, b_ref, yraw_ref, aff_ref,
               s1_ref, s2_ref):
        j = pl.program_id(0)

        @pl.when(j == 0)
        def _init():
            s1_ref[...] = jnp.zeros_like(s1_ref)
            s2_ref[...] = jnp.zeros_like(s2_ref)

        # One lane-dense MXU GEMM per tile: [Cout, Kp] @ [Kp, TM] -> [Cout, TM].
        y = jnp.dot(w_ref[...], p_ref[...], preferred_element_type=jnp.float32)
        y = y + cb_ref[...]                       # conv bias, [Cout, 1]
        yraw_ref[...] = y                         # unmasked lane-dense store

        if padded:  # mask columns beyond the true M (zero-padded tail tile)
            col = j * TM + lax.broadcasted_iota(jnp.int32, (1, TM), 1)
            ym = jnp.where(col < M_valid, y, 0.0)
        else:
            ym = y
        # Single-pass statistics (sum / sum-of-squares), register accumulation
        # inside the tile, one tiny [Cout, 1] scratch update per tile.
        s1_ref[...] += jnp.sum(ym, axis=1, keepdims=True)
        s2_ref[...] += jnp.sum(ym * y, axis=1, keepdims=True)

        @pl.when(j == pl.num_programs(0) - 1)
        def _finalize():
            mean = s1_ref[...] * inv_m
            var = s2_ref[...] * inv_m - mean * mean        # biased variance
            scale = g_ref[...] * lax.rsqrt(var + BN_EPS)
            shift = b_ref[...] - mean * scale
            aff_ref[:, 0:1] = scale
            aff_ref[:, 1:2] = shift

    return kernel


def _bn_relu_kernel(yraw_ref, aff_ref, out_ref):
    # out = relu(scale * y_raw + shift)   (lane-dense elementwise epilogue)
    out_ref[...] = jnp.maximum(
        yraw_ref[...] * aff_ref[:, 0:1] + aff_ref[:, 1:2], 0.0)


def _bn_res_relu_kernel(yraw_ref, aff_ref, res_ref, out_ref):
    # out = relu(scale * y_raw + shift + residual)
    out_ref[...] = jnp.maximum(
        yraw_ref[...] * aff_ref[:, 0:1] + aff_ref[:, 1:2] + res_ref[...], 0.0)


# ---------------------------------------------------------------------------
# pallas_call wrappers
# ---------------------------------------------------------------------------

def _conv_bn_stats(p, w, cb, g, b, *, TM, M_valid):
    Kp, Mp = p.shape
    Cout = w.shape[0]
    nM = Mp // TM
    grid_spec = pltpu.PrefetchScalarGridSpec(
        num_scalar_prefetch=0,
        grid=(nM,),
        in_specs=[
            pl.BlockSpec((Kp, TM), lambda j: (0, j)),    # im2col patches (tiled)
            pl.BlockSpec((Cout, Kp), lambda j: (0, 0)),  # packed weights
            pl.BlockSpec((Cout, 1), lambda j: (0, 0)),   # conv bias
            pl.BlockSpec((Cout, 1), lambda j: (0, 0)),   # BN gamma
            pl.BlockSpec((Cout, 1), lambda j: (0, 0)),   # BN beta
        ],
        out_specs=[
            pl.BlockSpec((Cout, TM), lambda j: (0, j)),  # raw conv output
            pl.BlockSpec((Cout, 2), lambda j: (0, 0)),   # (scale, shift)
        ],
        scratch_shapes=[pltpu.VMEM((Cout, 1), jnp.float32),   # sum
                        pltpu.VMEM((Cout, 1), jnp.float32)],  # sum of squares
    )
    per_step = 4 * (Kp * TM + Cout * (Kp + TM + 8))
    return pl.pallas_call(
        _make_conv_stats_kernel(TM, M_valid, Mp),
        out_shape=(jax.ShapeDtypeStruct((Cout, Mp), jnp.float32),
                   jax.ShapeDtypeStruct((Cout, 2), jnp.float32)),
        grid_spec=grid_spec,
        compiler_params=pltpu.CompilerParams(
            # BN stats accumulate sequentially across the M tiles.
            dimension_semantics=("arbitrary",),
            vmem_limit_bytes=_vmem_limit(per_step)),
    )(p, w, cb, g, b)


def _bn_relu(y_raw, aff, *, TM):
    Cout, Mp = y_raw.shape
    nM = Mp // TM
    grid_spec = pltpu.PrefetchScalarGridSpec(
        num_scalar_prefetch=0,
        grid=(nM,),
        in_specs=[pl.BlockSpec((Cout, TM), lambda j: (0, j)),
                  pl.BlockSpec((Cout, 2), lambda j: (0, 0))],
        out_specs=pl.BlockSpec((Cout, TM), lambda j: (0, j)),
    )
    return pl.pallas_call(
        _bn_relu_kernel,
        out_shape=jax.ShapeDtypeStruct((Cout, Mp), jnp.float32),
        grid_spec=grid_spec,
        compiler_params=pltpu.CompilerParams(
            dimension_semantics=("parallel",),   # megacore-shardable on v7x
            vmem_limit_bytes=_vmem_limit(4 * (2 * Cout * TM + 2 * Cout))),
    )(y_raw, aff)


def _bn_res_relu(y_raw, aff, res, *, TM):
    Cout, Mp = y_raw.shape
    nM = Mp // TM
    grid_spec = pltpu.PrefetchScalarGridSpec(
        num_scalar_prefetch=0,
        grid=(nM,),
        in_specs=[pl.BlockSpec((Cout, TM), lambda j: (0, j)),
                  pl.BlockSpec((Cout, 2), lambda j: (0, 0)),
                  pl.BlockSpec((Cout, TM), lambda j: (0, j))],
        out_specs=pl.BlockSpec((Cout, TM), lambda j: (0, j)),
    )
    return pl.pallas_call(
        _bn_res_relu_kernel,
        out_shape=jax.ShapeDtypeStruct((Cout, Mp), jnp.float32),
        grid_spec=grid_spec,
        compiler_params=pltpu.CompilerParams(
            dimension_semantics=("parallel",),
            vmem_limit_bytes=_vmem_limit(4 * (3 * Cout * TM + 2 * Cout))),
    )(y_raw, aff, res)


# ---------------------------------------------------------------------------
# Wrapper (glue: layout, padding, im2col -- indexing only, no FLOPs)
# ---------------------------------------------------------------------------

def _im2col_cm(x_cm, KH, KW, ph, pw, Kp, Mp):
    """im2col of a channel-major [C, N, H, W] tensor into a [Kp, Mp] matrix:
    P[(c, kh, kw), (n, h, w)] = x_pad[c, n, h + kh, w + kw].  Pure indexing."""
    C, N, H, W = x_cm.shape
    H1 = H + 2 * ph - KH + 1
    W1 = W + 2 * pw - KW + 1
    xp = jnp.pad(x_cm, ((0, 0), (0, 0), (ph, ph), (pw, pw)))
    h_idx = jnp.arange(H1)[:, None] + jnp.arange(KH)[None, :]   # [H1, KH]
    w_idx = jnp.arange(W1)[:, None] + jnp.arange(KW)[None, :]   # [W1, KW]
    t = xp[:, :, h_idx, :]            # [C, N, H1, KH, Wp]
    t = t[:, :, :, :, w_idx]          # [C, N, H1, KH, W1, KW]
    p = jnp.transpose(t, (0, 3, 5, 1, 2, 4)).reshape(C * KH * KW, N * H1 * W1)
    return jnp.pad(p, ((0, Kp - C * KH * KW), (0, Mp - N * H1 * W1)))


@functools.partial(jax.jit,
                   static_argnames=("stride", "kernel_hw", "padding", "tile_m"))
def block_forward(x_nchw, params, *, stride=1, kernel_hw=(45, 7),
                  padding=(22, 3), tile_m=256):
    """JAX/Pallas forward of the PyTorch `Block` (input/output in NCHW)."""
    if stride != 1:
        # TODO(synk): strided conv1 / strided IdentityPadding (MaxPool stride)
        # not implemented in this kernel.
        raise NotImplementedError("only stride=1 is supported by this kernel")

    KH, KW = kernel_hw
    ph, pw = padding
    N, Cin, H, W = x_nchw.shape
    Cout = params["w1"].shape[0]
    H1 = (H + 2 * ph - KH) // stride + 1
    W1 = W + 2 * pw - KW + 1

    M = N * H1 * W1
    TM = min(tile_m, _round_up(M, 128))
    assert TM % 128 == 0
    Mp = _round_up(M, TM)
    K1, K2 = Cin * KH * KW, Cout * KH * KW
    K1p, K2p = _round_up(K1, 128), _round_up(K2, 128)

    f32 = jnp.float32
    x_cm = jnp.transpose(x_nchw, (1, 0, 2, 3)).astype(f32)      # [Cin, N, H, W]

    # Lane-dense packed weights [Cout, Kp] and [Cout, 1] per-channel vectors.
    w1 = jnp.pad(params["w1"].astype(f32).reshape(Cout, K1),
                 ((0, 0), (0, K1p - K1)))
    w2 = jnp.pad(params["w2"].astype(f32).reshape(Cout, K2),
                 ((0, 0), (0, K2p - K2)))
    col = lambda v: v.astype(f32).reshape(Cout, 1)

    # Residual branch: IdentityPadding = zero-pad channels at the end;
    # MaxPool2d(1, stride=[1, 1]) is the identity for stride=1.
    res_cm = x_cm if Cin == Cout else jnp.pad(
        x_cm, ((0, Cout - Cin), (0, 0), (0, 0), (0, 0)))
    res = jnp.pad(res_cm.reshape(Cout, M), ((0, 0), (0, Mp - M)))

    # --- conv1 (+bias) as a big-K GEMM, BN1 batch stats fused in-kernel ---
    p1 = _im2col_cm(x_cm, KH, KW, ph, pw, K1p, Mp)
    y1_raw, aff1 = _conv_bn_stats(p1, w1, col(params["cb1"]),
                                  col(params["g1"]), col(params["b1"]),
                                  TM=TM, M_valid=M)
    # BN1 normalize + ReLU (second pass required by training-mode batch stats).
    y1 = _bn_relu(y1_raw, aff1, TM=TM)

    # --- conv2 (+bias) + BN2 stats, then BN2 normalize + residual + ReLU ---
    p2 = _im2col_cm(y1[:, :M].reshape(Cout, N, H1, W1), KH, KW, ph, pw, K2p, Mp)
    y2_raw, aff2 = _conv_bn_stats(p2, w2, col(params["cb2"]),
                                  col(params["g2"]), col(params["b2"]),
                                  TM=TM, M_valid=M)
    out_cm = _bn_res_relu(y2_raw, aff2, res, TM=TM)

    out = out_cm[:, :M].reshape(Cout, N, H1, W1)
    return jnp.transpose(out, (1, 0, 2, 3))                     # back to NCHW


# ---------------------------------------------------------------------------
# Pure-JAX reference (validation only)
# ---------------------------------------------------------------------------

def reference_forward(x, p, *, kernel_hw=(45, 7), padding=(22, 3)):
    """Pure-JAX NCHW reference mirroring the PyTorch forward."""
    KH, KW = kernel_hw
    ph, pw = padding

    def conv(h, w, b):
        dn = lax.conv_dimension_numbers(h.shape, w.shape, ("NCHW", "OIHW", "NCHW"))
        y = lax.conv_general_dilated(h, w, window_strides=(1, 1),
                                     padding=((ph, ph), (pw, pw)),
                                     dimension_numbers=dn)
        return y + b[None, :, None, None]

    def bn(y, g, be):
        mu = jnp.mean(y, axis=(0, 2, 3), keepdims=True)
        var = jnp.mean(jnp.square(y - mu), axis=(0, 2, 3), keepdims=True)
        return ((y - mu) / jnp.sqrt(var + BN_EPS) * g[None, :, None, None]
                + be[None, :, None, None])

    y = jnp.maximum(bn(conv(x, p["w1"], p["cb1"]), p["g1"], p["b1"]), 0.0)
    y2 = bn(conv(y, p["w2"], p["cb2"]), p["g2"], p["b2"])
    y2 = y2 + x   # projection is None (channels_in == num_filters)
    return jnp.maximum(y2, 0.0)


if __name__ == "__main__":
    key = jax.random.PRNGKey(0)
    N, C, H, W = 2, 4, 16, 16
    Cout = 4               # channels_in == num_filters -> projection is None
    KH, KW = 45, 7

    ks = jax.random.split(key, 9)
    x = jax.random.normal(ks[0], (N, C, H, W), jnp.float32)
    params = dict(
        w1=0.05 * jax.random.normal(ks[1], (Cout, C, KH, KW), jnp.float32),
        cb1=0.1 * jax.random.normal(ks[2], (Cout,), jnp.float32),
        g1=1.0 + 0.1 * jax.random.normal(ks[3], (Cout,), jnp.float32),
        b1=0.1 * jax.random.normal(ks[4], (Cout,), jnp.float32),
        w2=0.05 * jax.random.normal(ks[5], (Cout, Cout, KH, KW), jnp.float32),
        cb2=0.1 * jax.random.normal(ks[6], (Cout,), jnp.float32),
        g2=1.0 + 0.1 * jax.random.normal(ks[7], (Cout,), jnp.float32),
        b2=0.1 * jax.random.normal(ks[8], (Cout,), jnp.float32),
    )

    out = jax.block_until_ready(block_forward(x, params))
    ref = jax.block_until_ready(reference_forward(x, params))

    assert out.shape == (N, Cout, H, W), out.shape
    if not jnp.allclose(out, ref, atol=2e-3, rtol=2e-3):
        raise AssertionError(
            f"kernel/reference mismatch, max abs err = {jnp.max(jnp.abs(out - ref))}")
    print("KERNEL_OK")
</pallas_src>

<mosaic_0001>
module attributes {stable_mosaic.version = 11 : i64} {
  func.func @_bn_relu_kernel(%arg0: i32, %arg1: memref<4x256xf32, #tpu.memory_space<vmem>>, %arg2: memref<4x2xf32, #tpu.memory_space<vmem>>, %arg3: memref<4x256xf32, #tpu.memory_space<vmem>>) attributes {dimension_semantics = [#tpu.dimension_semantics<parallel>], iteration_bounds = array<i64: 2>, scalar_prefetch = 0 : i64, scratch_operands = 0 : i64, tpu.core_type = #tpu.core_type<tc>, window_params = [{transform_indices = @transform_0, window_bounds = array<i64: 4, 256>}, {pipeline_mode = #tpu.pipeline_mode<synchronous>, transform_indices = @transform_1, window_bounds = array<i64: 4, 2>}, {transform_indices = @transform_2, window_bounds = array<i64: 4, 256>}]} {
    %c0 = arith.constant 0 : index
    %c0_0 = arith.constant 0 : index
    %0 = vector.load %arg1[%c0, %c0_0] : memref<4x256xf32, #tpu.memory_space<vmem>>, vector<4x256xf32>
    %c0_1 = arith.constant 0 : index
    %c0_2 = arith.constant 0 : index
    %1 = vector.load %arg2[%c0_1, %c0_2] : memref<4x2xf32, #tpu.memory_space<vmem>>, vector<4x1xf32>
    %2 = vector.broadcast %1 : vector<4x1xf32> to vector<4x256xf32>
    %3 = arith.mulf %0, %2 : vector<4x256xf32>
    %c0_3 = arith.constant 0 : index
    %c1 = arith.constant 1 : index
    %4 = vector.load %arg2[%c0_3, %c1] : memref<4x2xf32, #tpu.memory_space<vmem>>, vector<4x1xf32>
    %5 = vector.broadcast %4 : vector<4x1xf32> to vector<4x256xf32>
    %6 = arith.addf %3, %5 : vector<4x256xf32>
    %cst = arith.constant 0.000000e+00 : f32
    %7 = vector.broadcast %cst : f32 to vector<4x256xf32>
    %8 = arith.maximumf %6, %7 : vector<4x256xf32>
    %c0_4 = arith.constant 0 : index
    %c0_5 = arith.constant 0 : index
    %9 = vector.load %arg3[%c0_4, %c0_5] : memref<4x256xf32, #tpu.memory_space<vmem>>, vector<4x256xf32>
    tpu.vector_store %arg3[%c0_4, %c0_5], %8 {strides = array<i32>} : memref<4x256xf32, #tpu.memory_space<vmem>>, vector<4x256xf32>,
    return
  }
  func.func @transform_0(%arg0: i32) -> (i32, i32) {
    %c0_i32 = arith.constant 0 : i32
    %c0_i32_0 = arith.constant 0 : i32
    return %c0_i32, %arg0 : i32, i32
  }
  func.func @transform_1(%arg0: i32) -> (i32, i32) {
    %c0_i32 = arith.constant 0 : i32
    %c0_i32_0 = arith.constant 0 : i32
    %c0_i32_1 = arith.constant 0 : i32
    return %c0_i32, %c0_i32_0 : i32, i32
  }
  func.func @transform_2(%arg0: i32) -> (i32, i32) {
    %c0_i32 = arith.constant 0 : i32
    %c0_i32_0 = arith.constant 0 : i32
    return %c0_i32, %arg0 : i32, i32
  }
}

module attributes {stable_mosaic.version = 11 : i64} {
  func.func @kernel(%arg0: i32, %arg1: memref<1280x256xf32, #tpu.memory_space<vmem>>, %arg2: memref<4x1280xf32, #tpu.memory_space<vmem>>, %arg3: memref<4x1xf32, #tpu.memory_space<vmem>>, %arg4: memref<4x1xf32, #tpu.memory_space<vmem>>, %arg5: memref<4x1xf32, #tpu.memory_space<vmem>>, %arg6: memref<4x256xf32, #tpu.memory_space<vmem>>, %arg7: memref<4x2xf32, #tpu.memory_space<vmem>>, %arg8: memref<4x1xf32, #tpu.memory_space<vmem>>, %arg9: memref<4x1xf32, #tpu.memory_space<vmem>>) attributes {dimension_semantics = [#tpu.dimension_semantics<arbitrary>], iteration_bounds = array<i64: 2>, scalar_prefetch = 0 : i64, scratch_operands = 2 : i64, tpu.core_type = #tpu.core_type<tc>, window_params = [{transform_indices = @transform_0, window_bounds = array<i64: 1280, 256>}, {pipeline_mode = #tpu.pipeline_mode<synchronous>, transform_indices = @transform_1, window_bounds = array<i64: 4, 1280>}, {pipeline_mode = #tpu.pipeline_mode<synchronous>, transform_indices = @transform_2, window_bounds = array<i64: 4, 1>}, {pipeline_mode = #tpu.pipeline_mode<synchronous>, transform_indices = @transform_3, window_bounds = array<i64: 4, 1>}, {pipeline_mode = #tpu.pipeline_mode<synchronous>, transform_indices = @transform_4, window_bounds = array<i64: 4, 1>}, {transform_indices = @transform_5, window_bounds = array<i64: 4, 256>}, {pipeline_mode = #tpu.pipeline_mode<synchronous>, transform_indices = @transform_6, window_bounds = array<i64: 4, 2>}]} {
    %c0_i32 = arith.constant 0 : i32
    %0 = arith.cmpi eq, %arg0, %c0_i32 : i32
    %1 = arith.extui %0 : i1 to i32
    %c0_i32_0 = arith.constant 0 : i32
    %2 = arith.cmpi ne, %1, %c0_i32_0 : i32
    scf.if %2 {
      %cst_19 = arith.constant 0.000000e+00 : f32
      %24 = vector.broadcast %cst_19 : f32 to vector<4x1xf32>
      %c0_20 = arith.constant 0 : index
      %c0_21 = arith.constant 0 : index
      %25 = vector.load %arg8[%c0_20, %c0_21] : memref<4x1xf32, #tpu.memory_space<vmem>>, vector<4x1xf32>
      tpu.vector_store %arg8[%c0_20, %c0_21], %24 {strides = array<i32>} : memref<4x1xf32, #tpu.memory_space<vmem>>, vector<4x1xf32>,
      %cst_22 = arith.constant 0.000000e+00 : f32
      %26 = vector.broadcast %cst_22 : f32 to vector<4x1xf32>
      %c0_23 = arith.constant 0 : index
      %c0_24 = arith.constant 0 : index
      %27 = vector.load %arg9[%c0_23, %c0_24] : memref<4x1xf32, #tpu.memory_space<vmem>>, vector<4x1xf32>
      tpu.vector_store %arg9[%c0_23, %c0_24], %26 {strides = array<i32>} : memref<4x1xf32, #tpu.memory_space<vmem>>, vector<4x1xf32>,
    } else {
    }
    %c0 = arith.constant 0 : index
    %c0_1 = arith.constant 0 : index
    %3 = vector.load %arg2[%c0, %c0_1] : memref<4x1280xf32, #tpu.memory_space<vmem>>, vector<4x1280xf32>
    %c0_2 = arith.constant 0 : index
    %c0_3 = arith.constant 0 : index
    %4 = vector.load %arg1[%c0_2, %c0_3] : memref<1280x256xf32, #tpu.memory_space<vmem>>, vector<1280x256xf32>
    %cst = arith.constant dense<0.000000e+00> : vector<4x256xf32>
    %5 = tpu.matmul %3, %4, %cst {dimension_numbers = #tpu.dot_dimension_numbers<[1], [0], [0], [1], [0, 0, 1, 1], [], []>} : vector<4x1280xf32>, vector<1280x256xf32>, vector<4x256xf32> -> vector<4x256xf32>
    %c0_4 = arith.constant 0 : index
    %c0_5 = arith.constant 0 : index
    %6 = vector.load %arg3[%c0_4, %c0_5] : memref<4x1xf32, #tpu.memory_space<vmem>>, vector<4x1xf32>
    %7 = vector.broadcast %6 : vector<4x1xf32> to vector<4x256xf32>
    %8 = arith.addf %5, %7 : vector<4x256xf32>
    %c0_6 = arith.constant 0 : index
    %c0_7 = arith.constant 0 : index
    %9 = vector.load %arg6[%c0_6, %c0_7] : memref<4x256xf32, #tpu.memory_space<vmem>>, vector<4x256xf32>
    tpu.vector_store %arg6[%c0_6, %c0_7], %8 {strides = array<i32>} : memref<4x256xf32, #tpu.memory_space<vmem>>, vector<4x256xf32>,
    %c0_8 = arith.constant 0 : index
    %c0_9 = arith.constant 0 : index
    %10 = vector.load %arg8[%c0_8, %c0_9] : memref<4x1xf32, #tpu.memory_space<vmem>>, vector<4x1xf32>
    %cst_10 = arith.constant dense<0.000000e+00> : vector<4xf32>
    %11 = vector.multi_reduction <add>, %8, %cst_10 [1] : vector<4x256xf32> to vector<4xf32>
    %12 = vector.shape_cast %11 : vector<4xf32> to vector<4x1xf32>
    %13 = arith.addf %10, %12 : vector<4x1xf32>
    %c0_11 = arith.constant 0 : index
    %c0_12 = arith.constant 0 : index
    %14 = vector.load %arg8[%c0_11, %c0_12] : memref<4x1xf32, #tpu.memory_space<vmem>>, vector<4x1xf32>
    tpu.vector_store %arg8[%c0_11, %c0_12], %13 {strides = array<i32>} : memref<4x1xf32, #tpu.memory_space<vmem>>, vector<4x1xf32>,
    %c0_13 = arith.constant 0 : index
    %c0_14 = arith.constant 0 : index
    %15 = vector.load %arg9[%c0_13, %c0_14] : memref<4x1xf32, #tpu.memory_space<vmem>>, vector<4x1xf32>
    %16 = arith.mulf %8, %8 : vector<4x256xf32>
    %cst_15 = arith.constant dense<0.000000e+00> : vector<4xf32>
    %17 = vector.multi_reduction <add>, %16, %cst_15 [1] : vector<4x256xf32> to vector<4xf32>
    %18 = vector.shape_cast %17 : vector<4xf32> to vector<4x1xf32>
    %19 = arith.addf %15, %18 : vector<4x1xf32>
    %c0_16 = arith.constant 0 : index
    %c0_17 = arith.constant 0 : index
    %20 = vector.load %arg9[%c0_16, %c0_17] : memref<4x1xf32, #tpu.memory_space<vmem>>, vector<4x1xf32>
    tpu.vector_store %arg9[%c0_16, %c0_17], %19 {strides = array<i32>} : memref<4x1xf32, #tpu.memory_space<vmem>>, vector<4x1xf32>,
    %c1_i32 = arith.constant 1 : i32
    %21 = arith.cmpi eq, %arg0, %c1_i32 : i32
    %22 = arith.extui %21 : i1 to i32
    %c0_i32_18 = arith.constant 0 : i32
    %23 = arith.cmpi ne, %22, %c0_i32_18 : i32
    scf.if %23 {
      %c0_19 = arith.constant 0 : index
      %c0_20 = arith.constant 0 : index
      %24 = vector.load %arg8[%c0_19, %c0_20] : memref<4x1xf32, #tpu.memory_space<vmem>>, vector<4x1xf32>
      %cst_21 = arith.constant 0.001953125 : f32
      %25 = vector.broadcast %cst_21 : f32 to vector<4x1xf32>
      %26 = arith.mulf %24, %25 : vector<4x1xf32>
      %c0_22 = arith.constant 0 : index
      %c0_23 = arith.constant 0 : index
      %27 = vector.load %arg9[%c0_22, %c0_23] : memref<4x1xf32, #tpu.memory_space<vmem>>, vector<4x1xf32>
      %cst_24 = arith.constant 0.001953125 : f32
      %28 = vector.broadcast %cst_24 : f32 to vector<4x1xf32>
      %29 = arith.mulf %27, %28 : vector<4x1xf32>
      %30 = arith.mulf %26, %26 : vector<4x1xf32>
      %31 = arith.subf %29, %30 : vector<4x1xf32>
      %c0_25 = arith.constant 0 : index
      %c0_26 = arith.constant 0 : index
      %32 = vector.load %arg4[%c0_25, %c0_26] : memref<4x1xf32, #tpu.memory_space<vmem>>, vector<4x1xf32>
      %cst_27 = arith.constant 9.99999974E-6 : f32
      %33 = vector.broadcast %cst_27 : f32 to vector<4x1xf32>
      %34 = arith.addf %31, %33 : vector<4x1xf32>
      %35 = math.rsqrt %34 : vector<4x1xf32>
      %36 = arith.mulf %32, %35 : vector<4x1xf32>
      %c0_28 = arith.constant 0 : index
      %c0_29 = arith.constant 0 : index
      %37 = vector.load %arg5[%c0_28, %c0_29] : memref<4x1xf32, #tpu.memory_space<vmem>>, vector<4x1xf32>
      %38 = arith.mulf %26, %36 : vector<4x1xf32>
      %39 = arith.subf %37, %38 : vector<4x1xf32>
      %c0_30 = arith.constant 0 : index
      %c0_31 = arith.constant 0 : index
      %40 = vector.load %arg7[%c0_30, %c0_31] : memref<4x2xf32, #tpu.memory_space<vmem>>, vector<4x1xf32>
      tpu.vector_store %arg7[%c0_30, %c0_31], %36 {strides = array<i32>} : memref<4x2xf32, #tpu.memory_space<vmem>>, vector<4x1xf32>,
      %c0_32 = arith.constant 0 : index
      %c1 = arith.constant 1 : index
      %41 = vector.load %arg7[%c0_32, %c1] : memref<4x2xf32, #tpu.memory_space<vmem>>, vector<4x1xf32>
      tpu.vector_store %arg7[%c0_32, %c1], %39 {strides = array<i32>} : memref<4x2xf32, #tpu.memory_space<vmem>>, vector<4x1xf32>,
    } else {
    }
    return
  }
  func.func @transform_0(%arg0: i32) -> (i32, i32) {
    %c0_i32 = arith.constant 0 : i32
    %c0_i32_0 = arith.constant 0 : i32
    return %c0_i32, %arg0 : i32, i32
  }
  func.func @transform_1(%arg0: i32) -> (i32, i32) {
    %c0_i32 = arith.constant 0 : i32
    %c0_i32_0 = arith.constant 0 : i32
    %c0_i32_1 = arith.constant 0 : i32
    return %c0_i32, %c0_i32_0 : i32, i32
  }
  func.func @transform_2(%arg0: i32) -> (i32, i32) {
    %c0_i32 = arith.constant 0 : i32
    %c0_i32_0 = arith.constant 0 : i32
    %c0_i32_1 = arith.constant 0 : i32
    return %c0_i32, %c0_i32_0 : i32, i32
  }
  func.func @transform_3(%arg0: i32) -> (i32, i32) {
    %c0_i32 = arith.constant 0 : i32
    %c0_i32_0 = arith.constant 0 : i32
    %c0_i32_1 = arith.constant 0 : i32
    return %c0_i32, %c0_i32_0 : i32, i32
  }
  func.func @transform_4(%arg0: i32) -> (i32, i32) {
    %c0_i32 = arith.constant 0 : i32
    %c0_i32_0 = arith.constant 0 : i32
    %c0_i32_1 = arith.constant 0 : i32
    return %c0_i32, %c0_i32_0 : i32, i32
  }
  func.func @transform_5(%arg0: i32) -> (i32, i32) {
    %c0_i32 = arith.constant 0 : i32
    %c0_i32_0 = arith.constant 0 : i32
    return %c0_i32, %arg0 : i32, i32
  }
  func.func @transform_6(%arg0: i32) -> (i32, i32) {
    %c0_i32 = arith.constant 0 : i32
    %c0_i32_0 = arith.constant 0 : i32
    %c0_i32_1 = arith.constant 0 : i32
    return %c0_i32, %c0_i32_0 : i32, i32
  }
}

module attributes {stable_mosaic.version = 11 : i64} {
  func.func @_bn_res_relu_kernel(%arg0: i32, %arg1: memref<4x256xf32, #tpu.memory_space<vmem>>, %arg2: memref<4x2xf32, #tpu.memory_space<vmem>>, %arg3: memref<4x256xf32, #tpu.memory_space<vmem>>, %arg4: memref<4x256xf32, #tpu.memory_space<vmem>>) attributes {dimension_semantics = [#tpu.dimension_semantics<parallel>], iteration_bounds = array<i64: 2>, scalar_prefetch = 0 : i64, scratch_operands = 0 : i64, tpu.core_type = #tpu.core_type<tc>, window_params = [{transform_indices = @transform_0, window_bounds = array<i64: 4, 256>}, {pipeline_mode = #tpu.pipeline_mode<synchronous>, transform_indices = @transform_1, window_bounds = array<i64: 4, 2>}, {transform_indices = @transform_2, window_bounds = array<i64: 4, 256>}, {transform_indices = @transform_3, window_bounds = array<i64: 4, 256>}]} {
    %c0 = arith.constant 0 : index
    %c0_0 = arith.constant 0 : index
    %0 = vector.load %arg1[%c0, %c0_0] : memref<4x256xf32, #tpu.memory_space<vmem>>, vector<4x256xf32>
    %c0_1 = arith.constant 0 : index
    %c0_2 = arith.constant 0 : index
    %1 = vector.load %arg2[%c0_1, %c0_2] : memref<4x2xf32, #tpu.memory_space<vmem>>, vector<4x1xf32>
    %2 = vector.broadcast %1 : vector<4x1xf32> to vector<4x256xf32>
    %3 = arith.mulf %0, %2 : vector<4x256xf32>
    %c0_3 = arith.constant 0 : index
    %c1 = arith.constant 1 : index
    %4 = vector.load %arg2[%c0_3, %c1] : memref<4x2xf32, #tpu.memory_space<vmem>>, vector<4x1xf32>
    %5 = vector.broadcast %4 : vector<4x1xf32> to vector<4x256xf32>
    %6 = arith.addf %3, %5 : vector<4x256xf32>
    %c0_4 = arith.constant 0 : index
    %c0_5 = arith.constant 0 : index
    %7 = vector.load %arg3[%c0_4, %c0_5] : memref<4x256xf32, #tpu.memory_space<vmem>>, vector<4x256xf32>
    %8 = arith.addf %6, %7 : vector<4x256xf32>
    %cst = arith.constant 0.000000e+00 : f32
    %9 = vector.broadcast %cst : f32 to vector<4x256xf32>
    %10 = arith.maximumf %8, %9 : vector<4x256xf32>
    %c0_6 = arith.constant 0 : index
    %c0_7 = arith.constant 0 : index
    %11 = vector.load %arg4[%c0_6, %c0_7] : memref<4x256xf32, #tpu.memory_space<vmem>>, vector<4x256xf32>
    tpu.vector_store %arg4[%c0_6, %c0_7], %10 {strides = array<i32>} : memref<4x256xf32, #tpu.memory_space<vmem>>, vector<4x256xf32>,
    return
  }
  func.func @transform_0(%arg0: i32) -> (i32, i32) {
    %c0_i32 = arith.constant 0 : i32
    %c0_i32_0 = arith.constant 0 : i32
    return %c0_i32, %arg0 : i32, i32
  }
  func.func @transform_1(%arg0: i32) -> (i32, i32) {
    %c0_i32 = arith.constant 0 : i32
    %c0_i32_0 = arith.constant 0 : i32
    %c0_i32_1 = arith.constant 0 : i32
    return %c0_i32, %c0_i32_0 : i32, i32
  }
  func.func @transform_2(%arg0: i32) -> (i32, i32) {
    %c0_i32 = arith.constant 0 : i32
    %c0_i32_0 = arith.constant 0 : i32
    return %c0_i32, %arg0 : i32, i32
  }
  func.func @transform_3(%arg0: i32) -> (i32, i32) {
    %c0_i32 = arith.constant 0 : i32
    %c0_i32_0 = arith.constant 0 : i32
    return %c0_i32, %arg0 : i32, i32
  }
}

</mosaic_0001>

<bundles_post_ra>
// kernel: block_forward.5
= control target key start
LH: loop header
LB: loop body
LE: loop exit
PB: predicated region body
PF: predicated region fallthrough
CT: control target
= control target key end

     0   :  { %s276_s9 = smov 0   ;;  %s296_s0 = inlined_call_operand.vmem [shape: f32[4,512], index: 0, kind: input, shape index: {}]   ;;  %s297_s1 = inlined_call_operand.vmem [shape: f32[4,2], index: 1, kind: input, shape index: {}]   ;;  %s298_s2 = inlined_call_operand.vmem [shape: f32[4,512], index: 2, kind: output, shape index: {}]  }
   0x1 LB: > { %s226_s10 = sadd.s32 4294967295, %s256_s9   ;;  %p230_p0 = scmp.ge.s32.totalorder %s256_s9, 1  ;;  %s256_s9 = sphi %s276_s9, %s12_s9  }
   0x2   : > { %p113_p1 = scmp.lt.s32.totalorder %s256_s9, 3 }
   0x4   : > { %p114_p2 = pnand %p230_p0, %p113_p1 }
   0x5   : > { %s231_s13 = sshll.u32 (!%p114_p2), %s226_s10, 1 }
   0x6   : > { %117 = sbr.rel (%p114_p2) target bundleno = 144 (0x90), region = 28  ;;  %p136_p3 = scmp.lt.s32.totalorder (!%p114_p2), %s231_s13, 3 }
   0xb   : > { %v148_v0 = vld [vmem:[%s297_s1] sm:$0xf]  ;;  %v258_v1 = vmov 0   ;;  %v259_v2 = vmov 1   ;;  %s300_s13 = smov (!%p136_p3, %s231_s13), 3 }
   0xc   : > { %248 = vset.pattern.permute.xlu0 %v258_v1  ;;  %v260_v3 = vmov 839922192   ;;  %s232_s14 = sshll.u32 %s300_s13, 2 }
   0xd   : > { %151 = vperm.xlu0 %248, %v148_v0   ;;  %v154_v4 = vunpack.c.l.s4 %v260_v3  ;;  %s139_s17 = scalar_lea.vmem %s296_s0, %s232_s14  ;;  %s145_s20 = scalar_lea.vmem %s298_s2, %s232_s14 }
   0xe   : > { %v147_v8 = vld [vmem:[%s139_s17] sm:$0xff] }
   0xf   : > { %v155_v6 = vunpack.c.0.s8 %v154_v4 }
  0x15   : > { %249 = vset.pattern.permute.xlu0 %v259_v2 }
  0x16   : > { %160 = vperm.xlu0 %249, %v148_v0  }
  0x7f   : > { %v152_v5 = vpop.permute.xlu0 %151 }
  0x80   : > { %v156_v7 = vperm.slane %v152_v5, %v155_v6 }
  0x82   : > { %v158_v10 = vmul.f32 %v156_v7, %v147_v8 }
  0x88   : > { %v161_v9 = vpop.permute.xlu0 %160 }
  0x89   : > { %v165_v11 = vperm.slane %v161_v9, %v155_v6 }
  0x8b   : > { %v167_v12 = vadd.f32 %v165_v11, %v158_v10 }
  0x8d   : > { %v168_v13 = vmax.f32 %v167_v12, 0.0 }
  0x8f   : > { %169 = vst [vmem:[%s145_s20] sm:$0xff] %v168_v13 }
  0x90 PF: > { %s12_s9 = sadd.s32 1, %s256_s9  }
  0x91   : > { %p9_p4 = scmp.ge.s32.totalorder %s12_s9, 4  }
  0x93   :  { %11 = sbr.rel (!%p9_p4) target bundleno = 1 (0x1), region = 58 }

// kernel: block_forward.4
= control target key start
LH: loop header
LB: loop body
LE: loop exit
PB: predicated region body
PF: predicated region fallthrough
CT: control target
= control target key end

     0   :  { %s1916_s21 = smov 0   ;;  %s1918_s22 = smov 0   ;;  %s3013_s0 = inlined_call_operand.vmem [shape: f32[1280,512], index: 0, kind: input, shape index: {}]   ;;  %s3014_s1 = inlined_call_operand.vmem [shape: f32[4,1280], index: 1, kind: input, shape index: {}]   ;;  %s3015_s2 = inlined_call_operand.vmem [shape: f32[4,1], index: 2, kind: input, shape index: {}]   ;;  %s3016_s3 = inlined_call_operand.vmem [shape: f32[4,1], index: 3, kind: input, shape index: {}]   ;;  %s3017_s4 = inlined_call_operand.vmem [shape: f32[4,1], index: 4, kind: input, shape index: {}]   ;;  %s3018_s5 = inlined_call_operand.vmem [shape: f32[4,512], index: 5, kind: output, shape index: {0}]   ;;  %s3019_s6 = inlined_call_operand.vmem [shape: f32[4,2], index: 6, kind: output, shape index: {1}]  }
   0x1   :  { %s1920_s23 = smov 0  }
   0x2 LB: > { %s1932_s24 = sadd.s32 4294967295, %s1876_s23   ;;  %s1935_s25 = sadd.s32 1, %s1876_s23   ;;  %s1876_s23 = sphi %s1920_s23, %s3022_s23   ;;  %s1872_s22 = sphi %s1918_s22, %s3021_s22   ;;  %s1868_s21 = sphi %s1916_s21, %s3020_s21  }
   0x3   : > { %s21_s26 = ssub.s32 %s1876_s23, %s1935_s25  ;;  %s24_s27 = sadd.s32 1, %s1872_s22 }
   0x4   : > { %p22_p0 = scmp.eq.s32.totalorder %s21_s26, 0  ;;  %p31_p1 = scmp.ne.s32.totalorder %s1872_s22, %s1868_s21 }
   0x5   : > { %p32_p2 = scmp.eq.s32.totalorder %s1876_s23, 0  ;;  %p1811_p4 = scmp.ge.s32.totalorder %s1876_s23, 2 }
   0x6   : > { %s1944_s28 = scalar_select %p22_p0, %s1872_s22, %s24_s27  }
   0x7   : > { %p33_p3 = por %p32_p2, %p31_p1  ;;  %200 = sbr.rel (%p1811_p4) target bundleno = 336 (0x150), region = 32 }
   0xc   : > { %203 = sbr.rel (!%p33_p3) target bundleno = 336 (0x150), region = 36  ;;  %s205_s29 = sand.u32 (%p33_p3), 1, %s1872_s22  }
   0xd   : > { %s1821_s30 = sshll.u32 (%p33_p3), %s1876_s23, 4  ;;  %s1822_s7 = smul.u32 (%p33_p3), 2560, %s205_s29 }
   0xe   : > { %s1952_s10 = scalar_lea.vmem (%p33_p3), %s3013_s0, %s1821_s30 }
   0xf   : > { %v223_v0 = vld [vmem:[%s1952_s10] sm:$0xff] (%p33_p3)  ;;  %v225_v1 = vld [vmem:[%s1952_s10 + $0x8] sm:$0xff] (%p33_p3)  ;;  %s1957_s11 = scalar_lea.vmem (%p33_p3), [#allocation4], %s1822_s7 }
  0x10   : > { %v227_v2 = vld [vmem:[%s1952_s10 + $0x20] sm:$0xff] (%p33_p3)  ;;  %224 = vst [vmem:[%s1957_s11] sm:$0xff] (%p33_p3), %v223_v0  ;;  %v229_v3 = vld [vmem:[%s1952_s10 + $0x28] sm:$0xff] (%p33_p3) }
  0x11   : > { %226 = vst [vmem:[%s1957_s11 + $0x8] sm:$0xff] %v225_v1  ;;  %v231_v4 = vld [vmem:[%s1952_s10 + $0x40] sm:$0xff]  ;;  %v233_v5 = vld [vmem:[%s1952_s10 + $0x48] sm:$0xff] }
  0x12   : > { %228 = vst [vmem:[%s1957_s11 + $0x10] sm:$0xff] %v227_v2  ;;  %v235_v6 = vld [vmem:[%s1952_s10 + $0x60] sm:$0xff]  ;;  %v237_v7 = vld [vmem:[%s1952_s10 + $0x68] sm:$0xff] }
  0x13   : > { %230 = vst [vmem:[%s1957_s11 + $0x18] sm:$0xff] %v229_v3  ;;  %v239_v8 = vld [vmem:[%s1952_s10 + $0x80] sm:$0xff]  ;;  %v241_v9 = vld [vmem:[%s1952_s10 + $0x88] sm:$0xff] }
  0x14   : > { %232 = vst [vmem:[%s1957_s11 + $0x20] sm:$0xff] %v231_v4  ;;  %v243_v10 = vld [vmem:[%s1952_s10 + $0xa0] sm:$0xff]  ;;  %v245_v11 = vld [vmem:[%s1952_s10 + $0xa8] sm:$0xff] }
  0x15   : > { %234 = vst [vmem:[%s1957_s11 + $0x28] sm:$0xff] %v233_v5  ;;  %v247_v12 = vld [vmem:[%s1952_s10 + $0xc0] sm:$0xff]  ;;  %v249_v13 = vld [vmem:[%s1952_s10 + $0xc8] sm:$0xff] }
  0x16   : > { %236 = vst [vmem:[%s1957_s11 + $0x30] sm:$0xff] %v235_v6  ;;  %v251_v14 = vld [vmem:[%s1952_s10 + $0xe0] sm:$0xff]  ;;  %v253_v15 = vld [vmem:[%s1952_s10 + $0xe8] sm:$0xff] }
  0x17   : > { %238 = vst [vmem:[%s1957_s11 + $0x38] sm:$0xff] %v237_v7  ;;  %v255_v16 = vld [vmem:[%s1952_s10 + $0x100] sm:$0xff]  ;;  %v257_v17 = vld [vmem:[%s1952_s10 + $0x108] sm:$0xff] }
  0x18   : > { %240 = vst [vmem:[%s1957_s11 + $0x40] sm:$0xff] %v239_v8  ;;  %v259_v18 = vld [vmem:[%s1952_s10 + $0x120] sm:$0xff]  ;;  %v261_v19 = vld [vmem:[%s1952_s10 + $0x128] sm:$0xff] }
  0x19   : > { %242 = vst [vmem:[%s1957_s11 + $0x48] sm:$0xff] %v241_v9  ;;  %v263_v20 = vld [vmem:[%s1952_s10 + $0x140] sm:$0xff]  ;;  %v265_v21 = vld [vmem:[%s1952_s10 + $0x148] sm:$0xff] }
  0x1a   : > { %244 = vst [vmem:[%s1957_s11 + $0x50] sm:$0xff] %v243_v10  ;;  %v267_v22 = vld [vmem:[%s1952_s10 + $0x160] sm:$0xff]  ;;  %v269_v23 = vld [vmem:[%s1952_s10 + $0x168] sm:$0xff] }
  0x1b   : > { %246 = vst [vmem:[%s1957_s11 + $0x58] sm:$0xff] %v245_v11  ;;  %v271_v24 = vld [vmem:[%s1952_s10 + $0x180] sm:$0xff]  ;;  %v273_v25 = vld [vmem:[%s1952_s10 + $0x188] sm:$0xff] }
  0x1c   : > { %248 = vst [vmem:[%s1957_s11 + $0x60] sm:$0xff] %v247_v12  ;;  %v275_v26 = vld [vmem:[%s1952_s10 + $0x1a0] sm:$0xff]  ;;  %v277_v27 = vld [vmem:[%s1952_s10 + $0x1a8] sm:$0xff] }
  0x1d   : > { %250 = vst [vmem:[%s1957_s11 + $0x68] sm:$0xff] %v249_v13  ;;  %v279_v28 = vld [vmem:[%s1952_s10 + $0x1c0] sm:$0xff]  ;;  %v281_v29 = vld [vmem:[%s1952_s10 + $0x1c8] sm:$0xff] }
  0x1e   : > { %252 = vst [vmem:[%s1957_s11 + $0x70] sm:$0xff] %v251_v14  ;;  %v283_v30 = vld [vmem:[%s1952_s10 + $0x1e0] sm:$0xff]  ;;  %v285_v31 = vld [vmem:[%s1952_s10 + $0x1e8] sm:$0xff] }
  0x1f   : > { %254 = vst [vmem:[%s1957_s11 + $0x78] sm:$0xff] %v253_v15  ;;  %v287_v32 = vld [vmem:[%s1952_s10 + $0x200] sm:$0xff]  ;;  %v289_v33 = vld [vmem:[%s1952_s10 + $0x208] sm:$0xff] }
  0x20   : > { %256 = vst [vmem:[%s1957_s11 + $0x80] sm:$0xff] %v255_v16  ;;  %v291_v34 = vld [vmem:[%s1952_s10 + $0x220] sm:$0xff]  ;;  %v293_v35 = vld [vmem:[%s1952_s10 + $0x228] sm:$0xff] }
  0x21   : > { %258 = vst [vmem:[%s1957_s11 + $0x88] sm:$0xff] %v257_v17  ;;  %v295_v36 = vld [vmem:[%s1952_s10 + $0x240] sm:$0xff]  ;;  %v297_v37 = vld [vmem:[%s1952_s10 + $0x248] sm:$0xff] }
  0x22   : > { %260 = vst [vmem:[%s1957_s11 + $0x90] sm:$0xff] %v259_v18  ;;  %v299_v38 = vld [vmem:[%s1952_s10 + $0x260] sm:$0xff]  ;;  %v301_v39 = vld [vmem:[%s1952_s10 + $0x268] sm:$0xff] }
  0x23   : > { %262 = vst [vmem:[%s1957_s11 + $0x98] sm:$0xff] %v261_v19  ;;  %v303_v40 = vld [vmem:[%s1952_s10 + $0x280] sm:$0xff]  ;;  %v305_v41 = vld [vmem:[%s1952_s10 + $0x288] sm:$0xff] }
  0x24   : > { %264 = vst [vmem:[%s1957_s11 + $0xa0] sm:$0xff] %v263_v20  ;;  %v307_v42 = vld [vmem:[%s1952_s10 + $0x2a0] sm:$0xff]  ;;  %v309_v43 = vld [vmem:[%s1952_s10 + $0x2a8] sm:$0xff] }
  0x25   : > { %266 = vst [vmem:[%s1957_s11 + $0xa8] sm:$0xff] %v265_v21  ;;  %v311_v44 = vld [vmem:[%s1952_s10 + $0x2c0] sm:$0xff]  ;;  %v313_v45 = vld [vmem:[%s1952_s10 + $0x2c8] sm:$0xff] }
  0x26   : > { %268 = vst [vmem:[%s1957_s11 + $0xb0] sm:$0xff] %v267_v22  ;;  %v315_v46 = vld [vmem:[%s1952_s10 + $0x2e0] sm:$0xff]  ;;  %v317_v47 = vld [vmem:[%s1952_s10 + $0x2e8] sm:$0xff] }
  0x27   : > { %270 = vst [vmem:[%s1957_s11 + $0xb8] sm:$0xff] %v269_v23  ;;  %v319_v48 = vld [vmem:[%s1952_s10 + $0x300] sm:$0xff]  ;;  %v321_v49 = vld [vmem:[%s1952_s10 + $0x308] sm:$0xff] }
  0x28   : > { %272 = vst [vmem:[%s1957_s11 + $0xc0] sm:$0xff] %v271_v24  ;;  %v323_v50 = vld [vmem:[%s1952_s10 + $0x320] sm:$0xff]  ;;  %v325_v51 = vld [vmem:[%s1952_s10 + $0x328] sm:$0xff] }
  0x29   : > { %274 = vst [vmem:[%s1957_s11 + $0xc8] sm:$0xff] %v273_v25  ;;  %v327_v52 = vld [vmem:[%s1952_s10 + $0x340] sm:$0xff]  ;;  %v329_v53 = vld [vmem:[%s1952_s10 + $0x348] sm:$0xff] }
  0x2a   : > { %276 = vst [vmem:[%s1957_s11 + $0xd0] sm:$0xff] %v275_v26  ;;  %v331_v54 = vld [vmem:[%s1952_s10 + $0x360] sm:$0xff]  ;;  %v333_v55 = vld [vmem:[%s1952_s10 + $0x368] sm:$0xff] }
  0x2b   : > { %278 = vst [vmem:[%s1957_s11 + $0xd8] sm:$0xff] %v277_v27  ;;  %v335_v56 = vld [vmem:[%s1952_s10 + $0x380] sm:$0xff]  ;;  %v337_v57 = vld [vmem:[%s1952_s10 + $0x388] sm:$0xff] }
  0x2c   : > { %280 = vst [vmem:[%s1957_s11 + $0xe0] sm:$0xff] %v279_v28  ;;  %v339_v58 = vld [vmem:[%s1952_s10 + $0x3a0] sm:$0xff]  ;;  %v341_v59 = vld [vmem:[%s1952_s10 + $0x3a8] sm:$0xff] }
  0x2d   : > { %282 = vst [vmem:[%s1957_s11 + $0xe8] sm:$0xff] %v281_v29  ;;  %v343_v60 = vld [vmem:[%s1952_s10 + $0x3c0] sm:$0xff]  ;;  %v345_v61 = vld [vmem:[%s1952_s10 + $0x3c8] sm:$0xff] }
  0x2e   : > { %284 = vst [vmem:[%s1957_s11 + $0xf0] sm:$0xff] %v283_v30  ;;  %v347_v62 = vld [vmem:[%s1952_s10 + $0x3e0] sm:$0xff]  ;;  %v349_v63 = vld [vmem:[%s1952_s10 + $0x3e8] sm:$0xff] }
  0x2f   : > { %286 = vst [vmem:[%s1957_s11 + $0xf8] sm:$0xff] %v285_v31  ;;  %v351_v0 = vld [vmem:[%s1952_s10 + $0x400] sm:$0xff]  ;;  %v353_v1 = vld [vmem:[%s1952_s10 + $0x408] sm:$0xff] }
  0x30   : > { %288 = vst [vmem:[%s1957_s11 + $0x100] sm:$0xff] %v287_v32  ;;  %v355_v2 = vld [vmem:[%s1952_s10 + $0x420] sm:$0xff]  ;;  %v357_v3 = vld [vmem:[%s1952_s10 + $0x428] sm:$0xff] }
  0x31   : > { %290 = vst [vmem:[%s1957_s11 + $0x108] sm:$0xff] %v289_v33  ;;  %v359_v4 = vld [vmem:[%s1952_s10 + $0x440] sm:$0xff]  ;;  %v361_v5 = vld [vmem:[%s1952_s10 + $0x448] sm:$0xff] }
  0x32   : > { %292 = vst [vmem:[%s1957_s11 + $0x110] sm:$0xff] %v291_v34  ;;  %v363_v6 = vld [vmem:[%s1952_s10 + $0x460] sm:$0xff]  ;;  %v365_v7 = vld [vmem:[%s1952_s10 + $0x468] sm:$0xff] }
  0x33   : > { %294 = vst [vmem:[%s1957_s11 + $0x118] sm:$0xff] %v293_v35  ;;  %v367_v8 = vld [vmem:[%s1952_s10 + $0x480] sm:$0xff]  ;;  %v369_v9 = vld [vmem:[%s1952_s10 + $0x488] sm:$0xff] }
  0x34   : > { %296 = vst [vmem:[%s1957_s11 + $0x120] sm:$0xff] %v295_v36  ;;  %v371_v10 = vld [vmem:[%s1952_s10 + $0x4a0] sm:$0xff]  ;;  %v373_v11 = vld [vmem:[%s1952_s10 + $0x4a8] sm:$0xff] }
  0x35   : > { %298 = vst [vmem:[%s1957_s11 + $0x128] sm:$0xff] %v297_v37  ;;  %v375_v12 = vld [vmem:[%s1952_s10 + $0x4c0] sm:$0xff]  ;;  %v377_v13 = vld [vmem:[%s1952_s10 + $0x4c8] sm:$0xff] }
  0x36   : > { %300 = vst [vmem:[%s1957_s11 + $0x130] sm:$0xff] %v299_v38  ;;  %v379_v14 = vld [vmem:[%s1952_s10 + $0x4e0] sm:$0xff]  ;;  %v381_v15 = vld [vmem:[%s1952_s10 + $0x4e8] sm:$0xff] }
  0x37   : > { %302 = vst [vmem:[%s1957_s11 + $0x138] sm:$0xff] %v301_v39  ;;  %v383_v16 = vld [vmem:[%s1952_s10 + $0x500] sm:$0xff]  ;;  %v385_v17 = vld [vmem:[%s1952_s10 + $0x508] sm:$0xff] }
  0x38   : > { %304 = vst [vmem:[%s1957_s11 + $0x140] sm:$0xff] %v303_v40  ;;  %v387_v18 = vld [vmem:[%s1952_s10 + $0x520] sm:$0xff]  ;;  %v389_v19 = vld [vmem:[%s1952_s10 + $0x528] sm:$0xff] }
  0x39   : > { %306 = vst [vmem:[%s1957_s11 + $0x148] sm:$0xff] %v305_v41  ;;  %v391_v20 = vld [vmem:[%s1952_s10 + $0x540] sm:$0xff]  ;;  %v393_v21 = vld [vmem:[%s1952_s10 + $0x548] sm:$0xff] }
  0x3a   : > { %308 = vst [vmem:[%s1957_s11 + $0x150] sm:$0xff] %v307_v42  ;;  %v395_v22 = vld [vmem:[%s1952_s10 + $0x560] sm:$0xff]  ;;  %v397_v23 = vld [vmem:[%s1952_s10 + $0x568] sm:$0xff] }
  0x3b   : > { %310 = vst [vmem:[%s1957_s11 + $0x158] sm:$0xff] %v309_v43  ;;  %v399_v24 = vld [vmem:[%s1952_s10 + $0x580] sm:$0xff]  ;;  %v401_v25 = vld [vmem:[%s1952_s10 + $0x588] sm:$0xff] }
  0x3c   : > { %312 = vst [vmem:[%s1957_s11 + $0x160] sm:$0xff] %v311_v44  ;;  %v403_v26 = vld [vmem:[%s1952_s10 + $0x5a0] sm:$0xff]  ;;  %v405_v27 = vld [vmem:[%s1952_s10 + $0x5a8] sm:$0xff] }
  0x3d   : > { %314 = vst [vmem:[%s1957_s11 + $0x168] sm:$0xff] %v313_v45  ;;  %v407_v28 = vld [vmem:[%s1952_s10 + $0x5c0] sm:$0xff]  ;;  %v409_v29 = vld [vmem:[%s1952_s10 + $0x5c8] sm:$0xff] }
  0x3e   : > { %316 = vst [vmem:[%s1957_s11 + $0x170] sm:$0xff] %v315_v46  ;;  %v411_v30 = vld [vmem:[%s1952_s10 + $0x5e0] sm:$0xff]  ;;  %v413_v31 = vld [vmem:[%s1952_s10 + $0x5e8] sm:$0xff] }
  0x3f   : > { %318 = vst [vmem:[%s1957_s11 + $0x178] sm:$0xff] %v317_v47  ;;  %v415_v32 = vld [vmem:[%s1952_s10 + $0x600] sm:$0xff]  ;;  %v417_v33 = vld [vmem:[%s1952_s10 + $0x608] sm:$0xff] }
  0x40   : > { %320 = vst [vmem:[%s1957_s11 + $0x180] sm:$0xff] %v319_v48  ;;  %v419_v34 = vld [vmem:[%s1952_s10 + $0x620] sm:$0xff]  ;;  %v421_v35 = vld [vmem:[%s1952_s10 + $0x628] sm:$0xff] }
  0x41   : > { %322 = vst [vmem:[%s1957_s11 + $0x188] sm:$0xff] %v321_v49  ;;  %v423_v36 = vld [vmem:[%s1952_s10 + $0x640] sm:$0xff]  ;;  %v425_v37 = vld [vmem:[%s1952_s10 + $0x648] sm:$0xff] }
  0x42   : > { %324 = vst [vmem:[%s1957_s11 + $0x190] sm:$0xff] %v323_v50  ;;  %v427_v38 = vld [vmem:[%s1952_s10 + $0x660] sm:$0xff]  ;;  %v429_v39 = vld [vmem:[%s1952_s10 + $0x668] sm:$0xff] }
  0x43   : > { %326 = vst [vmem:[%s1957_s11 + $0x198] sm:$0xff] %v325_v51  ;;  %v431_v40 = vld [vmem:[%s1952_s10 + $0x680] sm:$0xff]  ;;  %v433_v41 = vld [vmem:[%s1952_s10 + $0x688] sm:$0xff] }
  0x44   : > { %328 = vst [vmem:[%s1957_s11 + $0x1a0] sm:$0xff] %v327_v52  ;;  %v435_v42 = vld [vmem:[%s1952_s10 + $0x6a0] sm:$0xff]  ;;  %v437_v43 = vld [vmem:[%s1952_s10 + $0x6a8] sm:$0xff] }
  0x45   : > { %330 = vst [vmem:[%s1957_s11 + $0x1a8] sm:$0xff] %v329_v53  ;;  %v439_v44 = vld [vmem:[%s1952_s10 + $0x6c0] sm:$0xff]  ;;  %v441_v45 = vld [vmem:[%s1952_s10 + $0x6c8] sm:$0xff] }
  0x46   : > { %332 = vst [vmem:[%s1957_s11 + $0x1b0] sm:$0xff] %v331_v54  ;;  %v443_v46 = vld [vmem:[%s1952_s10 + $0x6e0] sm:$0xff]  ;;  %v445_v47 = vld [vmem:[%s1952_s10 + $0x6e8] sm:$0xff] }
  0x47   : > { %334 = vst [vmem:[%s1957_s11 + $0x1b8] sm:$0xff] %v333_v55  ;;  %v447_v48 = vld [vmem:[%s1952_s10 + $0x700] sm:$0xff]  ;;  %v449_v49 = vld [vmem:[%s1952_s10 + $0x708] sm:$0xff] }
  0x48   : > { %336 = vst [vmem:[%s1957_s11 + $0x1c0] sm:$0xff] %v335_v56  ;;  %v451_v50 = vld [vmem:[%s1952_s10 + $0x720] sm:$0xff]  ;;  %v453_v51 = vld [vmem:[%s1952_s10 + $0x728] sm:$0xff] }
  0x49   : > { %338 = vst [vmem:[%s1957_s11 + $0x1c8] sm:$0xff] %v337_v57  ;;  %v455_v52 = vld [vmem:[%s1952_s10 + $0x740] sm:$0xff]  ;;  %v457_v53 = vld [vmem:[%s1952_s10 + $0x748] sm:$0xff] }
  0x4a   : > { %340 = vst [vmem:[%s1957_s11 + $0x1d0] sm:$0xff] %v339_v58  ;;  %v459_v54 = vld [vmem:[%s1952_s10 + $0x760] sm:$0xff]  ;;  %v461_v55 = vld [vmem:[%s1952_s10 + $0x768] sm:$0xff] }
  0x4b   : > { %342 = vst [vmem:[%s1957_s11 + $0x1d8] sm:$0xff] %v341_v59  ;;  %v463_v56 = vld [vmem:[%s1952_s10 + $0x780] sm:$0xff]  ;;  %v465_v57 = vld [vmem:[%s1952_s10 + $0x788] sm:$0xff] }
  0x4c   : > { %344 = vst [vmem:[%s1957_s11 + $0x1e0] sm:$0xff] %v343_v60  ;;  %v467_v58 = vld [vmem:[%s1952_s10 + $0x7a0] sm:$0xff]  ;;  %v469_v59 = vld [vmem:[%s1952_s10 + $0x7a8] sm:$0xff] }
  0x4d   : > { %346 = vst [vmem:[%s1957_s11 + $0x1e8] sm:$0xff] %v345_v61  ;;  %v471_v60 = vld [vmem:[%s1952_s10 + $0x7c0] sm:$0xff]  ;;  %v473_v61 = vld [vmem:[%s1952_s10 + $0x7c8] sm:$0xff] }
  0x4e   : > { %348 = vst [vmem:[%s1957_s11 + $0x1f0] sm:$0xff] %v347_v62  ;;  %v475_v62 = vld [vmem:[%s1952_s10 + $0x7e0] sm:$0xff] }
  0x4f   : > { %350 = vst [vmem:[%s1957_s11 + $0x1f8] sm:$0xff] %v349_v63  ;;  %v477_v63 = vld [vmem:[%s1952_s10 + $0x7e8] sm:$0xff] }
  0x50   : > { %352 = vst [vmem:[%s1957_s11 + $0x200] sm:$0xff] %v351_v0  ;;  %v479_v0 = vld [vmem:[%s1952_s10 + $0x800] sm:$0xff] }
  0x51   : > { %354 = vst [vmem:[%s1957_s11 + $0x208] sm:$0xff] %v353_v1  ;;  %v481_v1 = vld [vmem:[%s1952_s10 + $0x808] sm:$0xff] }
  0x52   : > { %356 = vst [vmem:[%s1957_s11 + $0x210] sm:$0xff] %v355_v2  ;;  %v483_v2 = vld [vmem:[%s1952_s10 + $0x820] sm:$0xff] }
  0x53   : > { %358 = vst [vmem:[%s1957_s11 + $0x218] sm:$0xff] %v357_v3  ;;  %v485_v3 = vld [vmem:[%s1952_s10 + $0x828] sm:$0xff] }
  0x54   : > { %360 = vst [vmem:[%s1957_s11 + $0x220] sm:$0xff] %v359_v4  ;;  %v487_v4 = vld [vmem:[%s1952_s10 + $0x840] sm:$0xff] }
  0x55   : > { %362 = vst [vmem:[%s1957_s11 + $0x228] sm:$0xff] %v361_v5  ;;  %v489_v5 = vld [vmem:[%s1952_s10 + $0x848] sm:$0xff] }
  0x56   : > { %364 = vst [vmem:[%s1957_s11 + $0x230] sm:$0xff] %v363_v6  ;;  %v491_v6 = vld [vmem:[%s1952_s10 + $0x860] sm:$0xff] }
  0x57   : > { %366 = vst [vmem:[%s1957_s11 + $0x238] sm:$0xff] %v365_v7  ;;  %v493_v7 = vld [vmem:[%s1952_s10 + $0x868] sm:$0xff] }
  0x58   : > { %368 = vst [vmem:[%s1957_s11 + $0x240] sm:$0xff] %v367_v8  ;;  %v495_v8 = vld [vmem:[%s1952_s10 + $0x880] sm:$0xff] }
  0x59   : > { %370 = vst [vmem:[%s1957_s11 + $0x248] sm:$0xff] %v369_v9  ;;  %v497_v9 = vld [vmem:[%s1952_s10 + $0x888] sm:$0xff] }
  0x5a   : > { %372 = vst [vmem:[%s1957_s11 + $0x250] sm:$0xff] %v371_v10  ;;  %v499_v10 = vld [vmem:[%s1952_s10 + $0x8a0] sm:$0xff] }
  0x5b   : > { %374 = vst [vmem:[%s1957_s11 + $0x258] sm:$0xff] %v373_v11  ;;  %v501_v11 = vld [vmem:[%s1952_s10 + $0x8a8] sm:$0xff] }
  0x5c   : > { %376 = vst [vmem:[%s1957_s11 + $0x260] sm:$0xff] %v375_v12  ;;  %v503_v12 = vld [vmem:[%s1952_s10 + $0x8c0] sm:$0xff] }
  0x5d   : > { %378 = vst [vmem:[%s1957_s11 + $0x268] sm:$0xff] %v377_v13  ;;  %v505_v13 = vld [vmem:[%s1952_s10 + $0x8c8] sm:$0xff] }
  0x5e   : > { %380 = vst [vmem:[%s1957_s11 + $0x270] sm:$0xff] %v379_v14  ;;  %v507_v14 = vld [vmem:[%s1952_s10 + $0x8e0] sm:$0xff] }
  0x5f   : > { %382 = vst [vmem:[%s1957_s11 + $0x278] sm:$0xff] %v381_v15  ;;  %v509_v15 = vld [vmem:[%s1952_s10 + $0x8e8] sm:$0xff] }
  0x60   : > { %384 = vst [vmem:[%s1957_s11 + $0x280] sm:$0xff] %v383_v16  ;;  %v511_v16 = vld [vmem:[%s1952_s10 + $0x900] sm:$0xff] }
  0x61   : > { %386 = vst [vmem:[%s1957_s11 + $0x288] sm:$0xff] %v385_v17  ;;  %v513_v17 = vld [vmem:[%s1952_s10 + $0x908] sm:$0xff] }
  0x62   : > { %388 = vst [vmem:[%s1957_s11 + $0x290] sm:$0xff] %v387_v18  ;;  %v515_v18 = vld [vmem:[%s1952_s10 + $0x920] sm:$0xff] }
  0x63   : > { %390 = vst [vmem:[%s1957_s11 + $0x298] sm:$0xff] %v389_v19  ;;  %v517_v19 = vld [vmem:[%s1952_s10 + $0x928] sm:$0xff] }
  0x64   : > { %392 = vst [vmem:[%s1957_s11 + $0x2a0] sm:$0xff] %v391_v20  ;;  %v519_v20 = vld [vmem:[%s1952_s10 + $0x940] sm:$0xff] }
  0x65   : > { %394 = vst [vmem:[%s1957_s11 + $0x2a8] sm:$0xff] %v393_v21  ;;  %v521_v21 = vld [vmem:[%s1952_s10 + $0x948] sm:$0xff] }
  0x66   : > { %396 = vst [vmem:[%s1957_s11 + $0x2b0] sm:$0xff] %v395_v22  ;;  %v523_v22 = vld [vmem:[%s1952_s10 + $0x960] sm:$0xff] }
  0x67   : > { %398 = vst [vmem:[%s1957_s11 + $0x2b8] sm:$0xff] %v397_v23  ;;  %v525_v23 = vld [vmem:[%s1952_s10 + $0x968] sm:$0xff] }
  0x68   : > { %400 = vst [vmem:[%s1957_s11 + $0x2c0] sm:$0xff] %v399_v24  ;;  %v527_v24 = vld [vmem:[%s1952_s10 + $0x980] sm:$0xff] }
  0x69   : > { %402 = vst [vmem:[%s1957_s11 + $0x2c8] sm:$0xff] %v401_v25  ;;  %v529_v25 = vld [vmem:[%s1952_s10 + $0x988] sm:$0xff] }
  0x6a   : > { %404 = vst [vmem:[%s1957_s11 + $0x2d0] sm:$0xff] %v403_v26  ;;  %v531_v26 = vld [vmem:[%s1952_s10 + $0x9a0] sm:$0xff] }
  0x6b   : > { %406 = vst [vmem:[%s1957_s11 + $0x2d8] sm:$0xff] %v405_v27  ;;  %v533_v27 = vld [vmem:[%s1952_s10 + $0x9a8] sm:$0xff] }
  0x6c   : > { %408 = vst [vmem:[%s1957_s11 + $0x2e0] sm:$0xff] %v407_v28  ;;  %v535_v28 = vld [vmem:[%s1952_s10 + $0x9c0] sm:$0xff] }
  0x6d   : > { %410 = vst [vmem:[%s1957_s11 + $0x2e8] sm:$0xff] %v409_v29  ;;  %v537_v29 = vld [vmem:[%s1952_s10 + $0x9c8] sm:$0xff] }
  0x6e   : > { %412 = vst [vmem:[%s1957_s11 + $0x2f0] sm:$0xff] %v411_v30  ;;  %v539_v30 = vld [vmem:[%s1952_s10 + $0x9e0] sm:$0xff] }
  0x6f   : > { %414 = vst [vmem:[%s1957_s11 + $0x2f8] sm:$0xff] %v413_v31  ;;  %v541_v31 = vld [vmem:[%s1952_s10 + $0x9e8] sm:$0xff] }
  0x70   : > { %416 = vst [vmem:[%s1957_s11 + $0x300] sm:$0xff] %v415_v32  ;;  %v543_v32 = vld [vmem:[%s1952_s10 + $0xa00] sm:$0xff] }
  0x71   : > { %418 = vst [vmem:[%s1957_s11 + $0x308] sm:$0xff] %v417_v33  ;;  %v545_v33 = vld [vmem:[%s1952_s10 + $0xa08] sm:$0xff] }
  0x72   : > { %420 = vst [vmem:[%s1957_s11 + $0x310] sm:$0xff] %v419_v34  ;;  %v547_v34 = vld [vmem:[%s1952_s10 + $0xa20] sm:$0xff] }
  0x73   : > { %422 = vst [vmem:[%s1957_s11 + $0x318] sm:$0xff] %v421_v35  ;;  %v549_v35 = vld [vmem:[%s1952_s10 + $0xa28] sm:$0xff] }
  0x74   : > { %424 = vst [vmem:[%s1957_s11 + $0x320] sm:$0xff] %v423_v36  ;;  %v551_v36 = vld [vmem:[%s1952_s10 + $0xa40] sm:$0xff] }
  0x75   : > { %426 = vst [vmem:[%s1957_s11 + $0x328] sm:$0xff] %v425_v37  ;;  %v553_v37 = vld [vmem:[%s1952_s10 + $0xa48] sm:$0xff] }
  0x76   : > { %428 = vst [vmem:[%s1957_s11 + $0x330] sm:$0xff] %v427_v38  ;;  %v555_v38 = vld [vmem:[%s1952_s10 + $0xa60] sm:$0xff] }
  0x77   : > { %430 = vst [vmem:[%s1957_s11 + $0x338] sm:$0xff] %v429_v39  ;;  %v557_v39 = vld [vmem:[%s1952_s10 + $0xa68] sm:$0xff] }
  0x78   : > { %432 = vst [vmem:[%s1957_s11 + $0x340] sm:$0xff] %v431_v40  ;;  %v559_v40 = vld [vmem:[%s1952_s10 + $0xa80] sm:$0xff] }
  0x79   : > { %434 = vst [vmem:[%s1957_s11 + $0x348] sm:$0xff] %v433_v41  ;;  %v561_v41 = vld [vmem:[%s1952_s10 + $0xa88] sm:$0xff] }
  0x7a   : > { %436 = vst [vmem:[%s1957_s11 + $0x350] sm:$0xff] %v435_v42  ;;  %v563_v42 = vld [vmem:[%s1952_s10 + $0xaa0] sm:$0xff] }
  0x7b   : > { %438 = vst [vmem:[%s1957_s11 + $0x358] sm:$0xff] %v437_v43  ;;  %v565_v43 = vld [vmem:[%s1952_s10 + $0xaa8] sm:$0xff] }
  0x7c   : > { %440 = vst [vmem:[%s1957_s11 + $0x360] sm:$0xff] %v439_v44  ;;  %v567_v44 = vld [vmem:[%s1952_s10 + $0xac0] sm:$0xff] }
  0x7d   : > { %442 = vst [vmem:[%s1957_s11 + $0x368] sm:$0xff] %v441_v45  ;;  %v569_v45 = vld [vmem:[%s1952_s10 + $0xac8] sm:$0xff] }
  0x7e   : > { %444 = vst [vmem:[%s1957_s11 + $0x370] sm:$0xff] %v443_v46  ;;  %v571_v46 = vld [vmem:[%s1952_s10 + $0xae0] sm:$0xff] }
  0x7f   : > { %446 = vst [vmem:[%s1957_s11 + $0x378] sm:$0xff] %v445_v47  ;;  %v573_v47 = vld [vmem:[%s1952_s10 + $0xae8] sm:$0xff] }
  0x80   : > { %448 = vst [vmem:[%s1957_s11 + $0x380] sm:$0xff] %v447_v48  ;;  %v575_v48 = vld [vmem:[%s1952_s10 + $0xb00] sm:$0xff] }
  0x81   : > { %450 = vst [vmem:[%s1957_s11 + $0x388] sm:$0xff] %v449_v49  ;;  %v577_v49 = vld [vmem:[%s1952_s10 + $0xb08] sm:$0xff] }
  0x82   : > { %452 = vst [vmem:[%s1957_s11 + $0x390] sm:$0xff] %v451_v50  ;;  %v579_v50 = vld [vmem:[%s1952_s10 + $0xb20] sm:$0xff] }
  0x83   : > { %454 = vst [vmem:[%s1957_s11 + $0x398] sm:$0xff] %v453_v51  ;;  %v581_v51 = vld [vmem:[%s1952_s10 + $0xb28] sm:$0xff] }
  0x84   : > { %456 = vst [vmem:[%s1957_s11 + $0x3a0] sm:$0xff] %v455_v52  ;;  %v583_v52 = vld [vmem:[%s1952_s10 + $0xb40] sm:$0xff] }
  0x85   : > { %458 = vst [vmem:[%s1957_s11 + $0x3a8] sm:$0xff] %v457_v53  ;;  %v585_v53 = vld [vmem:[%s1952_s10 + $0xb48] sm:$0xff] }
  0x86   : > { %460 = vst [vmem:[%s1957_s11 + $0x3b0] sm:$0xff] %v459_v54  ;;  %v587_v54 = vld [vmem:[%s1952_s10 + $0xb60] sm:$0xff] }
  0x87   : > { %462 = vst [vmem:[%s1957_s11 + $0x3b8] sm:$0xff] %v461_v55  ;;  %v589_v55 = vld [vmem:[%s1952_s10 + $0xb68] sm:$0xff] }
  0x88   : > { %464 = vst [vmem:[%s1957_s11 + $0x3c0] sm:$0xff] %v463_v56  ;;  %v591_v56 = vld [vmem:[%s1952_s10 + $0xb80] sm:$0xff] }
  0x89   : > { %466 = vst [vmem:[%s1957_s11 + $0x3c8] sm:$0xff] %v465_v57  ;;  %v593_v57 = vld [vmem:[%s1952_s10 + $0xb88] sm:$0xff] }
  0x8a   : > { %468 = vst [vmem:[%s1957_s11 + $0x3d0] sm:$0xff] %v467_v58  ;;  %v595_v58 = vld [vmem:[%s1952_s10 + $0xba0] sm:$0xff] }
  0x8b   : > { %470 = vst [vmem:[%s1957_s11 + $0x3d8] sm:$0xff] %v469_v59  ;;  %v597_v59 = vld [vmem:[%s1952_s10 + $0xba8] sm:$0xff] }
  0x8c   : > { %472 = vst [vmem:[%s1957_s11 + $0x3e0] sm:$0xff] %v471_v60  ;;  %v599_v60 = vld [vmem:[%s1952_s10 + $0xbc0] sm:$0xff] }
  0x8d   : > { %474 = vst [vmem:[%s1957_s11 + $0x3e8] sm:$0xff] %v473_v61  ;;  %v601_v61 = vld [vmem:[%s1952_s10 + $0xbc8] sm:$0xff] }
  0x8e   : > { %476 = vst [vmem:[%s1957_s11 + $0x3f0] sm:$0xff] %v475_v62  ;;  %v603_v62 = vld [vmem:[%s1952_s10 + $0xbe0] sm:$0xff] }
  0x8f   : > { %478 = vst [vmem:[%s1957_s11 + $0x3f8] sm:$0xff] %v477_v63  ;;  %v605_v63 = vld [vmem:[%s1952_s10 + $0xbe8] sm:$0xff] }
  0x90   : > { %480 = vst [vmem:[%s1957_s11 + $0x400] sm:$0xff] %v479_v0  ;;  %v607_v0 = vld [vmem:[%s1952_s10 + $0xc00] sm:$0xff] }
  0x91   : > { %482 = vst [vmem:[%s1957_s11 + $0x408] sm:$0xff] %v481_v1  ;;  %v609_v1 = vld [vmem:[%s1952_s10 + $0xc08] sm:$0xff] }
  0x92   : > { %484 = vst [vmem:[%s1957_s11 + $0x410] sm:$0xff] %v483_v2  ;;  %v611_v2 = vld [vmem:[%s1952_s10 + $0xc20] sm:$0xff] }
  0x93   : > { %486 = vst [vmem:[%s1957_s11 + $0x418] sm:$0xff] %v485_v3  ;;  %v613_v3 = vld [vmem:[%s1952_s10 + $0xc28] sm:$0xff] }
  0x94   : > { %488 = vst [vmem:[%s1957_s11 + $0x420] sm:$0xff] %v487_v4  ;;  %v615_v4 = vld [vmem:[%s1952_s10 + $0xc40] sm:$0xff] }
  0x95   : > { %490 = vst [vmem:[%s1957_s11 + $0x428] sm:$0xff] %v489_v5  ;;  %v617_v5 = vld [vmem:[%s1952_s10 + $0xc48] sm:$0xff] }
  0x96   : > { %492 = vst [vmem:[%s1957_s11 + $0x430] sm:$0xff] %v491_v6  ;;  %v619_v6 = vld [vmem:[%s1952_s10 + $0xc60] sm:$0xff] }
  0x97   : > { %494 = vst [vmem:[%s1957_s11 + $0x438] sm:$0xff] %v493_v7  ;;  %v621_v7 = vld [vmem:[%s1952_s10 + $0xc68] sm:$0xff] }
  0x98   : > { %496 = vst [vmem:[%s1957_s11 + $0x440] sm:$0xff] %v495_v8  ;;  %v623_v8 = vld [vmem:[%s1952_s10 + $0xc80] sm:$0xff] }
  0x99   : > { %498 = vst [vmem:[%s1957_s11 + $0x448] sm:$0xff] %v497_v9  ;;  %v625_v9 = vld [vmem:[%s1952_s10 + $0xc88] sm:$0xff] }
  0x9a   : > { %500 = vst [vmem:[%s1957_s11 + $0x450] sm:$0xff] %v499_v10  ;;  %v627_v10 = vld [vmem:[%s1952_s10 + $0xca0] sm:$0xff] }
  0x9b   : > { %502 = vst [vmem:[%s1957_s11 + $0x458] sm:$0xff] %v501_v11  ;;  %v629_v11 = vld [vmem:[%s1952_s10 + $0xca8] sm:$0xff] }
  0x9c   : > { %504 = vst [vmem:[%s1957_s11 + $0x460] sm:$0xff] %v503_v12  ;;  %v631_v12 = vld [vmem:[%s1952_s10 + $0xcc0] sm:$0xff] }
  0x9d   : > { %506 = vst [vmem:[%s1957_s11 + $0x468] sm:$0xff] %v505_v13  ;;  %v633_v13 = vld [vmem:[%s1952_s10 + $0xcc8] sm:$0xff] }
  0x9e   : > { %508 = vst [vmem:[%s1957_s11 + $0x470] sm:$0xff] %v507_v14  ;;  %v635_v14 = vld [vmem:[%s1952_s10 + $0xce0] sm:$0xff] }
  0x9f   : > { %510 = vst [vmem:[%s1957_s11 + $0x478] sm:$0xff] %v509_v15  ;;  %v637_v15 = vld [vmem:[%s1952_s10 + $0xce8] sm:$0xff] }
  0xa0   : > { %512 = vst [vmem:[%s1957_s11 + $0x480] sm:$0xff] %v511_v16  ;;  %v639_v16 = vld [vmem:[%s1952_s10 + $0xd00] sm:$0xff] }
  0xa1   : > { %514 = vst [vmem:[%s1957_s11 + $0x488] sm:$0xff] %v513_v17  ;;  %v641_v17 = vld [vmem:[%s1952_s10 + $0xd08] sm:$0xff] }
  0xa2   : > { %516 = vst [vmem:[%s1957_s11 + $0x490] sm:$0xff] %v515_v18  ;;  %v643_v18 = vld [vmem:[%s1952_s10 + $0xd20] sm:$0xff] }
  0xa3   : > { %518 = vst [vmem:[%s1957_s11 + $0x498] sm:$0xff] %v517_v19  ;;  %v645_v19 = vld [vmem:[%s1952_s10 + $0xd28] sm:$0xff] }
  0xa4   : > { %520 = vst [vmem:[%s1957_s11 + $0x4a0] sm:$0xff] %v519_v20  ;;  %v647_v20 = vld [vmem:[%s1952_s10 + $0xd40] sm:$0xff] }
  0xa5   : > { %522 = vst [vmem:[%s1957_s11 + $0x4a8] sm:$0xff] %v521_v21  ;;  %v649_v21 = vld [vmem:[%s1952_s10 + $0xd48] sm:$0xff] }
  0xa6   : > { %524 = vst [vmem:[%s1957_s11 + $0x4b0] sm:$0xff] %v523_v22  ;;  %v651_v22 = vld [vmem:[%s1952_s10 + $0xd60] sm:$0xff] }
  0xa7   : > { %526 = vst [vmem:[%s1957_s11 + $0x4b8] sm:$0xff] %v525_v23  ;;  %v653_v23 = vld [vmem:[%s1952_s10 + $0xd68] sm:$0xff] }
  0xa8   : > { %528 = vst [vmem:[%s1957_s11 + $0x4c0] sm:$0xff] %v527_v24  ;;  %v655_v24 = vld [vmem:[%s1952_s10 + $0xd80] sm:$0xff] }
  0xa9   : > { %530 = vst [vmem:[%s1957_s11 + $0x4c8] sm:$0xff] %v529_v25  ;;  %v657_v25 = vld [vmem:[%s1952_s10 + $0xd88] sm:$0xff] }
  0xaa   : > { %532 = vst [vmem:[%s1957_s11 + $0x4d0] sm:$0xff] %v531_v26  ;;  %v659_v26 = vld [vmem:[%s1952_s10 + $0xda0] sm:$0xff] }
  0xab   : > { %534 = vst [vmem:[%s1957_s11 + $0x4d8] sm:$0xff] %v533_v27  ;;  %v661_v27 = vld [vmem:[%s1952_s10 + $0xda8] sm:$0xff] }
  0xac   : > { %536 = vst [vmem:[%s1957_s11 + $0x4e0] sm:$0xff] %v535_v28  ;;  %v663_v28 = vld [vmem:[%s1952_s10 + $0xdc0] sm:$0xff] }
  0xad   : > { %538 = vst [vmem:[%s1957_s11 + $0x4e8] sm:$0xff] %v537_v29  ;;  %v665_v29 = vld [vmem:[%s1952_s10 + $0xdc8] sm:$0xff] }
  0xae   : > { %540 = vst [vmem:[%s1957_s11 + $0x4f0] sm:$0xff] %v539_v30  ;;  %v667_v30 = vld [vmem:[%s1952_s10 + $0xde0] sm:$0xff] }
  0xaf   : > { %542 = vst [vmem:[%s1957_s11 + $0x4f8] sm:$0xff] %v541_v31  ;;  %v669_v31 = vld [vmem:[%s1952_s10 + $0xde8] sm:$0xff] }
  0xb0   : > { %544 = vst [vmem:[%s1957_s11 + $0x500] sm:$0xff] %v543_v32  ;;  %v671_v32 = vld [vmem:[%s1952_s10 + $0xe00] sm:$0xff] }
  0xb1   : > { %546 = vst [vmem:[%s1957_s11 + $0x508] sm:$0xff] %v545_v33  ;;  %v673_v33 = vld [vmem:[%s1952_s10 + $0xe08] sm:$0xff] }
  0xb2   : > { %548 = vst [vmem:[%s1957_s11 + $0x510] sm:$0xff] %v547_v34  ;;  %v675_v34 = vld [vmem:[%s1952_s10 + $0xe20] sm:$0xff] }
  0xb3   : > { %550 = vst [vmem:[%s1957_s11 + $0x518] sm:$0xff] %v549_v35  ;;  %v677_v35 = vld [vmem:[%s1952_s10 + $0xe28] sm:$0xff] }
  0xb4   : > { %552 = vst [vmem:[%s1957_s11 + $0x520] sm:$0xff] %v551_v36  ;;  %v679_v36 = vld [vmem:[%s1952_s10 + $0xe40] sm:$0xff] }
  0xb5   : > { %554 = vst [vmem:[%s1957_s11 + $0x528] sm:$0xff] %v553_v37  ;;  %v681_v37 = vld [vmem:[%s1952_s10 + $0xe48] sm:$0xff] }
  0xb6   : > { %556 = vst [vmem:[%s1957_s11 + $0x530] sm:$0xff] %v555_v38  ;;  %v683_v38 = vld [vmem:[%s1952_s10 + $0xe60] sm:$0xff] }
  0xb7   : > { %558 = vst [vmem:[%s1957_s11 + $0x538] sm:$0xff] %v557_v39  ;;  %v685_v39 = vld [vmem:[%s1952_s10 + $0xe68] sm:$0xff] }
  0xb8   : > { %560 = vst [vmem:[%s1957_s11 + $0x540] sm:$0xff] %v559_v40  ;;  %v687_v40 = vld [vmem:[%s1952_s10 + $0xe80] sm:$0xff] }
  0xb9   : > { %562 = vst [vmem:[%s1957_s11 + $0x548] sm:$0xff] %v561_v41  ;;  %v689_v41 = vld [vmem:[%s1952_s10 + $0xe88] sm:$0xff] }
  0xba   : > { %564 = vst [vmem:[%s1957_s11 + $0x550] sm:$0xff] %v563_v42  ;;  %v691_v42 = vld [vmem:[%s1952_s10 + $0xea0] sm:$0xff] }
  0xbb   : > { %566 = vst [vmem:[%s1957_s11 + $0x558] sm:$0xff] %v565_v43  ;;  %v693_v43 = vld [vmem:[%s1952_s10 + $0xea8] sm:$0xff] }
  0xbc   : > { %568 = vst [vmem:[%s1957_s11 + $0x560] sm:$0xff] %v567_v44  ;;  %v695_v44 = vld [vmem:[%s1952_s10 + $0xec0] sm:$0xff] }
  0xbd   : > { %570 = vst [vmem:[%s1957_s11 + $0x568] sm:$0xff] %v569_v45  ;;  %v697_v45 = vld [vmem:[%s1952_s10 + $0xec8] sm:$0xff] }
  0xbe   : > { %572 = vst [vmem:[%s1957_s11 + $0x570] sm:$0xff] %v571_v46  ;;  %v699_v46 = vld [vmem:[%s1952_s10 + $0xee0] sm:$0xff] }
  0xbf   : > { %574 = vst [vmem:[%s1957_s11 + $0x578] sm:$0xff] %v573_v47  ;;  %v701_v47 = vld [vmem:[%s1952_s10 + $0xee8] sm:$0xff] }
  0xc0   : > { %576 = vst [vmem:[%s1957_s11 + $0x580] sm:$0xff] %v575_v48  ;;  %v703_v48 = vld [vmem:[%s1952_s10 + $0xf00] sm:$0xff] }
  0xc1   : > { %578 = vst [vmem:[%s1957_s11 + $0x588] sm:$0xff] %v577_v49  ;;  %v705_v49 = vld [vmem:[%s1952_s10 + $0xf08] sm:$0xff] }
  0xc2   : > { %580 = vst [vmem:[%s1957_s11 + $0x590] sm:$0xff] %v579_v50  ;;  %v707_v50 = vld [vmem:[%s1952_s10 + $0xf20] sm:$0xff] }
  0xc3   : > { %582 = vst [vmem:[%s1957_s11 + $0x598] sm:$0xff] %v581_v51  ;;  %v709_v51 = vld [vmem:[%s1952_s10 + $0xf28] sm:$0xff] }
  0xc4   : > { %584 = vst [vmem:[%s1957_s11 + $0x5a0] sm:$0xff] %v583_v52  ;;  %v711_v52 = vld [vmem:[%s1952_s10 + $0xf40] sm:$0xff] }
  0xc5   : > { %586 = vst [vmem:[%s1957_s11 + $0x5a8] sm:$0xff] %v585_v53  ;;  %v713_v53 = vld [vmem:[%s1952_s10 + $0xf48] sm:$0xff] }
  0xc6   : > { %588 = vst [vmem:[%s1957_s11 + $0x5b0] sm:$0xff] %v587_v54  ;;  %v715_v54 = vld [vmem:[%s1952_s10 + $0xf60] sm:$0xff] }
  0xc7   : > { %590 = vst [vmem:[%s1957_s11 + $0x5b8] sm:$0xff] %v589_v55  ;;  %v717_v55 = vld [vmem:[%s1952_s10 + $0xf68] sm:$0xff] }
  0xc8   : > { %592 = vst [vmem:[%s1957_s11 + $0x5c0] sm:$0xff] %v591_v56  ;;  %v719_v56 = vld [vmem:[%s1952_s10 + $0xf80] sm:$0xff] }
  0xc9   : > { %594 = vst [vmem:[%s1957_s11 + $0x5c8] sm:$0xff] %v593_v57  ;;  %v721_v57 = vld [vmem:[%s1952_s10 + $0xf88] sm:$0xff] }
  0xca   : > { %596 = vst [vmem:[%s1957_s11 + $0x5d0] sm:$0xff] %v595_v58  ;;  %v723_v58 = vld [vmem:[%s1952_s10 + $0xfa0] sm:$0xff] }
  0xcb   : > { %598 = vst [vmem:[%s1957_s11 + $0x5d8] sm:$0xff] %v597_v59  ;;  %v725_v59 = vld [vmem:[%s1952_s10 + $0xfa8] sm:$0xff] }
  0xcc   : > { %600 = vst [vmem:[%s1957_s11 + $0x5e0] sm:$0xff] %v599_v60  ;;  %v727_v60 = vld [vmem:[%s1952_s10 + $0xfc0] sm:$0xff] }
  0xcd   : > { %602 = vst [vmem:[%s1957_s11 + $0x5e8] sm:$0xff] %v601_v61  ;;  %v729_v61 = vld [vmem:[%s1952_s10 + $0xfc8] sm:$0xff] }
  0xce   : > { %604 = vst [vmem:[%s1957_s11 + $0x5f0] sm:$0xff] %v603_v62  ;;  %v731_v62 = vld [vmem:[%s1952_s10 + $0xfe0] sm:$0xff] }
  0xcf   : > { %606 = vst [vmem:[%s1957_s11 + $0x5f8] sm:$0xff] %v605_v63  ;;  %v733_v63 = vld [vmem:[%s1952_s10 + $0xfe8] sm:$0xff] }
  0xd0   : > { %608 = vst [vmem:[%s1957_s11 + $0x600] sm:$0xff] %v607_v0  ;;  %v735_v0 = vld [vmem:[%s1952_s10 + $0x1000] sm:$0xff] }
  0xd1   : > { %610 = vst [vmem:[%s1957_s11 + $0x608] sm:$0xff] %v609_v1  ;;  %v737_v1 = vld [vmem:[%s1952_s10 + $0x1008] sm:$0xff] }
  0xd2   : > { %612 = vst [vmem:[%s1957_s11 + $0x610] sm:$0xff] %v611_v2  ;;  %v739_v2 = vld [vmem:[%s1952_s10 + $0x1020] sm:$0xff] }
  0xd3   : > { %614 = vst [vmem:[%s1957_s11 + $0x618] sm:$0xff] %v613_v3  ;;  %v741_v3 = vld [vmem:[%s1952_s10 + $0x1028] sm:$0xff] }
  0xd4   : > { %616 = vst [vmem:[%s1957_s11 + $0x620] sm:$0xff] %v615_v4  ;;  %v743_v4 = vld [vmem:[%s1952_s10 + $0x1040] sm:$0xff] }
  0xd5   : > { %618 = vst [vmem:[%s1957_s11 + $0x628] sm:$0xff] %v617_v5  ;;  %v745_v5 = vld [vmem:[%s1952_s10 + $0x1048] sm:$0xff] }
  0xd6   : > { %620 = vst [vmem:[%s1957_s11 + $0x630] sm:$0xff] %v619_v6  ;;  %v747_v6 = vld [vmem:[%s1952_s10 + $0x1060] sm:$0xff] }
  0xd7   : > { %622 = vst [vmem:[%s1957_s11 + $0x638] sm:$0xff] %v621_v7  ;;  %v749_v7 = vld [vmem:[%s1952_s10 + $0x1068] sm:$0xff] }
  0xd8   : > { %624 = vst [vmem:[%s1957_s11 + $0x640] sm:$0xff] %v623_v8  ;;  %v751_v8 = vld [vmem:[%s1952_s10 + $0x1080] sm:$0xff] }
  0xd9   : > { %626 = vst [vmem:[%s1957_s11 + $0x648] sm:$0xff] %v625_v9  ;;  %v753_v9 = vld [vmem:[%s1952_s10 + $0x1088] sm:$0xff] }
  0xda   : > { %628 = vst [vmem:[%s1957_s11 + $0x650] sm:$0xff] %v627_v10  ;;  %v755_v10 = vld [vmem:[%s1952_s10 + $0x10a0] sm:$0xff] }
  0xdb   : > { %630 = vst [vmem:[%s1957_s11 + $0x658] sm:$0xff] %v629_v11  ;;  %v757_v11 = vld [vmem:[%s1952_s10 + $0x10a8] sm:$0xff] }
  0xdc   : > { %632 = vst [vmem:[%s1957_s11 + $0x660] sm:$0xff] %v631_v12  ;;  %v759_v12 = vld [vmem:[%s1952_s10 + $0x10c0] sm:$0xff] }
  0xdd   : > { %634 = vst [vmem:[%s1957_s11 + $0x668] sm:$0xff] %v633_v13  ;;  %v761_v13 = vld [vmem:[%s1952_s10 + $0x10c8] sm:$0xff] }
  0xde   : > { %636 = vst [vmem:[%s1957_s11 + $0x670] sm:$0xff] %v635_v14  ;;  %v763_v14 = vld [vmem:[%s1952_s10 + $0x10e0] sm:$0xff] }
  0xdf   : > { %638 = vst [vmem:[%s1957_s11 + $0x678] sm:$0xff] %v637_v15  ;;  %v765_v15 = vld [vmem:[%s1952_s10 + $0x10e8] sm:$0xff] }
  0xe0   : > { %640 = vst [vmem:[%s1957_s11 + $0x680] sm:$0xff] %v639_v16  ;;  %v767_v16 = vld [vmem:[%s1952_s10 + $0x1100] sm:$0xff] }
  0xe1   : > { %642 = vst [vmem:[%s1957_s11 + $0x688] sm:$0xff] %v641_v17  ;;  %v769_v17 = vld [vmem:[%s1952_s10 + $0x1108] sm:$0xff] }
  0xe2   : > { %644 = vst [vmem:[%s1957_s11 + $0x690] sm:$0xff] %v643_v18  ;;  %v771_v18 = vld [vmem:[%s1952_s10 + $0x1120] sm:$0xff] }
  0xe3   : > { %646 = vst [vmem:[%s1957_s11 + $0x698] sm:$0xff] %v645_v19  ;;  %v773_v19 = vld [vmem:[%s1952_s10 + $0x1128] sm:$0xff] }
  0xe4   : > { %648 = vst [vmem:[%s1957_s11 + $0x6a0] sm:$0xff] %v647_v20  ;;  %v775_v20 = vld [vmem:[%s1952_s10 + $0x1140] sm:$0xff] }
  0xe5   : > { %650 = vst [vmem:[%s1957_s11 + $0x6a8] sm:$0xff] %v649_v21  ;;  %v777_v21 = vld [vmem:[%s1952_s10 + $0x1148] sm:$0xff] }
  0xe6   : > { %652 = vst [vmem:[%s1957_s11 + $0x6b0] sm:$0xff] %v651_v22  ;;  %v779_v22 = vld [vmem:[%s1952_s10 + $0x1160] sm:$0xff] }
  0xe7   : > { %654 = vst [vmem:[%s1957_s11 + $0x6b8] sm:$0xff] %v653_v23  ;;  %v781_v23 = vld [vmem:[%s1952_s10 + $0x1168] sm:$0xff] }
  0xe8   : > { %656 = vst [vmem:[%s1957_s11 + $0x6c0] sm:$0xff] %v655_v24  ;;  %v783_v24 = vld [vmem:[%s1952_s10 + $0x1180] sm:$0xff] }
  0xe9   : > { %658 = vst [vmem:[%s1957_s11 + $0x6c8] sm:$0xff] %v657_v25  ;;  %v785_v25 = vld [vmem:[%s1952_s10 + $0x1188] sm:$0xff] }
  0xea   : > { %660 = vst [vmem:[%s1957_s11 + $0x6d0] sm:$0xff] %v659_v26  ;;  %v787_v26 = vld [vmem:[%s1952_s10 + $0x11a0] sm:$0xff] }
  0xeb   : > { %662 = vst [vmem:[%s1957_s11 + $0x6d8] sm:$0xff] %v661_v27  ;;  %v789_v27 = vld [vmem:[%s1952_s10 + $0x11a8] sm:$0xff] }
  0xec   : > { %664 = vst [vmem:[%s1957_s11 + $0x6e0] sm:$0xff] %v663_v28  ;;  %v791_v28 = vld [vmem:[%s1952_s10 + $0x11c0] sm:$0xff] }
  0xed   : > { %666 = vst [vmem:[%s1957_s11 + $0x6e8] sm:$0xff] %v665_v29  ;;  %v793_v29 = vld [vmem:[%s1952_s10 + $0x11c8] sm:$0xff] }
  0xee   : > { %668 = vst [vmem:[%s1957_s11 + $0x6f0] sm:$0xff] %v667_v30  ;;  %v795_v30 = vld [vmem:[%s1952_s10 + $0x11e0] sm:$0xff] }
  0xef   : > { %670 = vst [vmem:[%s1957_s11 + $0x6f8] sm:$0xff] %v669_v31  ;;  %v797_v31 = vld [vmem:[%s1952_s10 + $0x11e8] sm:$0xff] }
  0xf0   : > { %672 = vst [vmem:[%s1957_s11 + $0x700] sm:$0xff] %v671_v32  ;;  %v799_v32 = vld [vmem:[%s1952_s10 + $0x1200] sm:$0xff] }
  0xf1   : > { %674 = vst [vmem:[%s1957_s11 + $0x708] sm:$0xff] %v673_v33  ;;  %v801_v33 = vld [vmem:[%s1952_s10 + $0x1208] sm:$0xff] }
  0xf2   : > { %676 = vst [vmem:[%s1957_s11 + $0x710] sm:$0xff] %v675_v34  ;;  %v803_v34 = vld [vmem:[%s1952_s10 + $0x1220] sm:$0xff] }
  0xf3   : > { %678 = vst [vmem:[%s1957_s11 + $0x718] sm:$0xff] %v677_v35  ;;  %v805_v35 = vld [vmem:[%s1952_s10 + $0x1228] sm:$0xff] }
  0xf4   : > { %680 = vst [vmem:[%s1957_s11 + $0x720] sm:$0xff] %v679_v36  ;;  %v807_v36 = vld [vmem:[%s1952_s10 + $0x1240] sm:$0xff] }
  0xf5   : > { %682 = vst [vmem:[%s1957_s11 + $0x728] sm:$0xff] %v681_v37  ;;  %v809_v37 = vld [vmem:[%s1952_s10 + $0x1248] sm:$0xff] }
  0xf6   : > { %684 = vst [vmem:[%s1957_s11 + $0x730] sm:$0xff] %v683_v38  ;;  %v811_v38 = vld [vmem:[%s1952_s10 + $0x1260] sm:$0xff] }
  0xf7   : > { %686 = vst [vmem:[%s1957_s11 + $0x738] sm:$0xff] %v685_v39  ;;  %v813_v39 = vld [vmem:[%s1952_s10 + $0x1268] sm:$0xff] }
  0xf8   : > { %688 = vst [vmem:[%s1957_s11 + $0x740] sm:$0xff] %v687_v40  ;;  %v815_v40 = vld [vmem:[%s1952_s10 + $0x1280] sm:$0xff] }
  0xf9   : > { %690 = vst [vmem:[%s1957_s11 + $0x748] sm:$0xff] %v689_v41  ;;  %v817_v41 = vld [vmem:[%s1952_s10 + $0x1288] sm:$0xff] }
  0xfa   : > { %692 = vst [vmem:[%s1957_s11 + $0x750] sm:$0xff] %v691_v42  ;;  %v819_v42 = vld [vmem:[%s1952_s10 + $0x12a0] sm:$0xff] }
  0xfb   : > { %694 = vst [vmem:[%s1957_s11 + $0x758] sm:$0xff] %v693_v43  ;;  %v821_v43 = vld [vmem:[%s1952_s10 + $0x12a8] sm:$0xff] }
  0xfc   : > { %696 = vst [vmem:[%s1957_s11 + $0x760] sm:$0xff] %v695_v44  ;;  %v823_v44 = vld [vmem:[%s1952_s10 + $0x12c0] sm:$0xff] }
  0xfd   : > { %698 = vst [vmem:[%s1957_s11 + $0x768] sm:$0xff] %v697_v45  ;;  %v825_v45 = vld [vmem:[%s1952_s10 + $0x12c8] sm:$0xff] }
  0xfe   : > { %700 = vst [vmem:[%s1957_s11 + $0x770] sm:$0xff] %v699_v46  ;;  %v827_v46 = vld [vmem:[%s1952_s10 + $0x12e0] sm:$0xff] }
  0xff   : > { %702 = vst [vmem:[%s1957_s11 + $0x778] sm:$0xff] %v701_v47  ;;  %v829_v47 = vld [vmem:[%s1952_s10 + $0x12e8] sm:$0xff] }
 0x100   : > { %704 = vst [vmem:[%s1957_s11 + $0x780] sm:$0xff] %v703_v48  ;;  %v831_v48 = vld [vmem:[%s1952_s10 + $0x1300] sm:$0xff] }
 0x101   : > { %706 = vst [vmem:[%s1957_s11 + $0x788] sm:$0xff] %v705_v49  ;;  %v833_v49 = vld [vmem:[%s1952_s10 + $0x1308] sm:$0xff] }
 0x102   : > { %708 = vst [vmem:[%s1957_s11 + $0x790] sm:$0xff] %v707_v50  ;;  %v835_v50 = vld [vmem:[%s1952_s10 + $0x1320] sm:$0xff] }
 0x103   : > { %710 = vst [vmem:[%s1957_s11 + $0x798] sm:$0xff] %v709_v51  ;;  %v837_v51 = vld [vmem:[%s1952_s10 + $0x1328] sm:$0xff] }
 0x104   : > { %712 = vst [vmem:[%s1957_s11 + $0x7a0] sm:$0xff] %v711_v52  ;;  %v839_v52 = vld [vmem:[%s1952_s10 + $0x1340] sm:$0xff] }
 0x105   : > { %714 = vst [vmem:[%s1957_s11 + $0x7a8] sm:$0xff] %v713_v53  ;;  %v841_v53 = vld [vmem:[%s1952_s10 + $0x1348] sm:$0xff] }
 0x106   : > { %716 = vst [vmem:[%s1957_s11 + $0x7b0] sm:$0xff] %v715_v54  ;;  %v843_v54 = vld [vmem:[%s1952_s10 + $0x1360] sm:$0xff] }
 0x107   : > { %718 = vst [vmem:[%s1957_s11 + $0x7b8] sm:$0xff] %v717_v55  ;;  %v845_v55 = vld [vmem:[%s1952_s10 + $0x1368] sm:$0xff] }
 0x108   : > { %720 = vst [vmem:[%s1957_s11 + $0x7c0] sm:$0xff] %v719_v56  ;;  %v847_v56 = vld [vmem:[%s1952_s10 + $0x1380] sm:$0xff] }
 0x109   : > { %722 = vst [vmem:[%s1957_s11 + $0x7c8] sm:$0xff] %v721_v57  ;;  %v849_v57 = vld [vmem:[%s1952_s10 + $0x1388] sm:$0xff] }
 0x10a   : > { %724 = vst [vmem:[%s1957_s11 + $0x7d0] sm:$0xff] %v723_v58  ;;  %v851_v58 = vld [vmem:[%s1952_s10 + $0x13a0] sm:$0xff] }
 0x10b   : > { %726 = vst [vmem:[%s1957_s11 + $0x7d8] sm:$0xff] %v725_v59  ;;  %v853_v59 = vld [vmem:[%s1952_s10 + $0x13a8] sm:$0xff] }
 0x10c   : > { %728 = vst [vmem:[%s1957_s11 + $0x7e0] sm:$0xff] %v727_v60  ;;  %v855_v60 = vld [vmem:[%s1952_s10 + $0x13c0] sm:$0xff] }
 0x10d   : > { %730 = vst [vmem:[%s1957_s11 + $0x7e8] sm:$0xff] %v729_v61  ;;  %v857_v61 = vld [vmem:[%s1952_s10 + $0x13c8] sm:$0xff] }
 0x10e   : > { %732 = vst [vmem:[%s1957_s11 + $0x7f0] sm:$0xff] %v731_v62  ;;  %v859_v62 = vld [vmem:[%s1952_s10 + $0x13e0] sm:$0xff] }
 0x10f   : > { %734 = vst [vmem:[%s1957_s11 + $0x7f8] sm:$0xff] %v733_v63  ;;  %v861_v63 = vld [vmem:[%s1952_s10 + $0x13e8] sm:$0xff] }
 0x110   : > { %736 = vst [vmem:[%s1957_s11 + $0x800] sm:$0xff] %v735_v0 }
 0x111   : > { %738 = vst [vmem:[%s1957_s11 + $0x808] sm:$0xff] %v737_v1 }
 0x112   : > { %740 = vst [vmem:[%s1957_s11 + $0x810] sm:$0xff] %v739_v2 }
 0x113   : > { %742 = vst [vmem:[%s1957_s11 + $0x818] sm:$0xff] %v741_v3 }
 0x114   : > { %744 = vst [vmem:[%s1957_s11 + $0x820] sm:$0xff] %v743_v4 }
 0x115   : > { %746 = vst [vmem:[%s1957_s11 + $0x828] sm:$0xff] %v745_v5 }
 0x116   : > { %748 = vst [vmem:[%s1957_s11 + $0x830] sm:$0xff] %v747_v6 }
 0x117   : > { %750 = vst [vmem:[%s1957_s11 + $0x838] sm:$0xff] %v749_v7 }
 0x118   : > { %752 = vst [vmem:[%s1957_s11 + $0x840] sm:$0xff] %v751_v8 }
 0x119   : > { %754 = vst [vmem:[%s1957_s11 + $0x848] sm:$0xff] %v753_v9 }
 0x11a   : > { %756 = vst [vmem:[%s1957_s11 + $0x850] sm:$0xff] %v755_v10 }
 0x11b   : > { %758 = vst [vmem:[%s1957_s11 + $0x858] sm:$0xff] %v757_v11 }
 0x11c   : > { %760 = vst [vmem:[%s1957_s11 + $0x860] sm:$0xff] %v759_v12 }
 0x11d   : > { %762 = vst [vmem:[%s1957_s11 + $0x868] sm:$0xff] %v761_v13 }
 0x11e   : > { %764 = vst [vmem:[%s1957_s11 + $0x870] sm:$0xff] %v763_v14 }
 0x11f   : > { %766 = vst [vmem:[%s1957_s11 + $0x878] sm:$0xff] %v765_v15 }
 0x120   : > { %768 = vst [vmem:[%s1957_s11 + $0x880] sm:$0xff] %v767_v16 }
 0x121   : > { %770 = vst [vmem:[%s1957_s11 + $0x888] sm:$0xff] %v769_v17 }
 0x122   : > { %772 = vst [vmem:[%s1957_s11 + $0x890] sm:$0xff] %v771_v18 }
 0x123   : > { %774 = vst [vmem:[%s1957_s11 + $0x898] sm:$0xff] %v773_v19 }
 0x124   : > { %776 = vst [vmem:[%s1957_s11 + $0x8a0] sm:$0xff] %v775_v20 }
 0x125   : > { %778 = vst [vmem:[%s1957_s11 + $0x8a8] sm:$0xff] %v777_v21 }
 0x126   : > { %780 = vst [vmem:[%s1957_s11 + $0x8b0] sm:$0xff] %v779_v22 }
 0x127   : > { %782 = vst [vmem:[%s1957_s11 + $0x8b8] sm:$0xff] %v781_v23 }
 0x128   : > { %784 = vst [vmem:[%s1957_s11 + $0x8c0] sm:$0xff] %v783_v24 }
 0x129   : > { %786 = vst [vmem:[%s1957_s11 + $0x8c8] sm:$0xff] %v785_v25 }
 0x12a   : > { %788 = vst [vmem:[%s1957_s11 + $0x8d0] sm:$0xff] %v787_v26 }
 0x12b   : > { %790 = vst [vmem:[%s1957_s11 + $0x8d8] sm:$0xff] %v789_v27 }
 0x12c   : > { %792 = vst [vmem:[%s1957_s11 + $0x8e0] sm:$0xff] %v791_v28 }
 0x12d   : > { %794 = vst [vmem:[%s1957_s11 + $0x8e8] sm:$0xff] %v793_v29 }
 0x12e   : > { %796 = vst [vmem:[%s1957_s11 + $0x8f0] sm:$0xff] %v795_v30 }
 0x12f   : > { %798 = vst [vmem:[%s1957_s11 + $0x8f8] sm:$0xff] %v797_v31 }
 0x130   : > { %800 = vst [vmem:[%s1957_s11 + $0x900] sm:$0xff] %v799_v32 }
 0x131   : > { %802 = vst [vmem:[%s1957_s11 + $0x908] sm:$0xff] %v801_v33 }
 0x132   : > { %804 = vst [vmem:[%s1957_s11 + $0x910] sm:$0xff] %v803_v34 }
 0x133   : > { %806 = vst [vmem:[%s1957_s11 + $0x918] sm:$0xff] %v805_v35 }
 0x134   : > { %808 = vst [vmem:[%s1957_s11 + $0x920] sm:$0xff] %v807_v36 }
 0x135   : > { %810 = vst [vmem:[%s1957_s11 + $0x928] sm:$0xff] %v809_v37 }
 0x136   : > { %812 = vst [vmem:[%s1957_s11 + $0x930] sm:$0xff] %v811_v38 }
 0x137   : > { %814 = vst [vmem:[%s1957_s11 + $0x938] sm:$0xff] %v813_v39 }
 0x138   : > { %816 = vst [vmem:[%s1957_s11 + $0x940] sm:$0xff] %v815_v40 }
 0x139   : > { %818 = vst [vmem:[%s1957_s11 + $0x948] sm:$0xff] %v817_v41 }
 0x13a   : > { %820 = vst [vmem:[%s1957_s11 + $0x950] sm:$0xff] %v819_v42 }
 0x13b   : > { %822 = vst [vmem:[%s1957_s11 + $0x958] sm:$0xff] %v821_v43 }
 0x13c   : > { %824 = vst [vmem:[%s1957_s11 + $0x960] sm:$0xff] %v823_v44 }
 0x13d   : > { %826 = vst [vmem:[%s1957_s11 + $0x968] sm:$0xff] %v825_v45 }
 0x13e   : > { %828 = vst [vmem:[%s1957_s11 + $0x970] sm:$0xff] %v827_v46 }
 0x13f   : > { %830 = vst [vmem:[%s1957_s11 + $0x978] sm:$0xff] %v829_v47 }
 0x140   : > { %832 = vst [vmem:[%s1957_s11 + $0x980] sm:$0xff] %v831_v48 }
 0x141   : > { %834 = vst [vmem:[%s1957_s11 + $0x988] sm:$0xff] %v833_v49 }
 0x142   : > { %836 = vst [vmem:[%s1957_s11 + $0x990] sm:$0xff] %v835_v50 }
 0x143   : > { %838 = vst [vmem:[%s1957_s11 + $0x998] sm:$0xff] %v837_v51 }
 0x144   : > { %840 = vst [vmem:[%s1957_s11 + $0x9a0] sm:$0xff] %v839_v52 }
 0x145   : > { %842 = vst [vmem:[%s1957_s11 + $0x9a8] sm:$0xff] %v841_v53 }
 0x146   : > { %844 = vst [vmem:[%s1957_s11 + $0x9b0] sm:$0xff] %v843_v54 }
 0x147   : > { %846 = vst [vmem:[%s1957_s11 + $0x9b8] sm:$0xff] %v845_v55 }
 0x148   : > { %848 = vst [vmem:[%s1957_s11 + $0x9c0] sm:$0xff] %v847_v56 }
 0x149   : > { %850 = vst [vmem:[%s1957_s11 + $0x9c8] sm:$0xff] %v849_v57 }
 0x14a   : > { %852 = vst [vmem:[%s1957_s11 + $0x9d0] sm:$0xff] %v851_v58 }
 0x14b   : > { %854 = vst [vmem:[%s1957_s11 + $0x9d8] sm:$0xff] %v853_v59 }
 0x14c   : > { %856 = vst [vmem:[%s1957_s11 + $0x9e0] sm:$0xff] %v855_v60 }
 0x14d   : > { %858 = vst [vmem:[%s1957_s11 + $0x9e8] sm:$0xff] %v857_v61 }
 0x14e   : > { %860 = vst [vmem:[%s1957_s11 + $0x9f0] sm:$0xff] %v859_v62 }
 0x14f   : > { %862 = vst [vmem:[%s1957_s11 + $0x9f8] sm:$0xff] %v861_v63 }
 0x150 PF: > { %p1814_p5 = scmp.ge.s32.totalorder %s1876_s23, 1  ;;  %p867_p6 = scmp.lt.s32.totalorder %s1876_s23, 3 }
 0x152   : > { %p868_p7 = pnand %p1814_p5, %p867_p6 }
 0x153   : > { %s874_s12 = sand.u32 (!%p868_p7), 1, %s1868_s21   ;;  %s1815_s13 = sshll.u32 (!%p868_p7), %s1932_s24, 1 }
 0x154   : > { %871 = sbr.rel (%p868_p7) target bundleno = 937 (0x3a9), region = 59  ;;  %p905_p8 = scmp.lt.s32.totalorder (!%p868_p7), %s1815_s13, 3 }
 0x155   : > { %s1823_s14 = smul.u32 (!%p868_p7), 2560, %s874_s12  ;;  %p1817_p9 = scmp.ne.s32.totalorder (!%p868_p7), %s1932_s24, 0 }
 0x157   : > { %s2605_s19 = scalar_lea.vmem (!%p868_p7), [#allocation4], %s1823_s14 }
 0x159   : > { %s3024_s13 = smov (!%p905_p8, %s1815_s13), 3  ;;  %913 = sbr.rel (%p1817_p9) target bundleno = 353 (0x161), region = 67 }
 0x15a   : > { %s1816_s15 = sshll.u32 %s3024_s13, 2 }
 0x15b   : > { %s2603_s18 = scalar_lea.vmem %s3018_s5, %s1816_s15 }
 0x15e   : > { %vm914_vm0 = vcmask 3072   ;;  %v1878_v0 = vmov 0.0  }
 0x15f   : > { %915 = vst.msk [vmem:[#allocation2] sm:$0xf] %vm914_vm0, %v1878_v0 }
 0x160   : > { %916 = vst.msk [vmem:[#allocation3] sm:$0xf] %vm914_vm0, %v1878_v0 }
 0x161 PF: > { %v952_v1 = vld [vmem:[%s2605_s19 + $0xf0] sm:$0xff]  ;;  %v950_v3 = vld [vmem:[%s2605_s19 + $0xe0] sm:$0xff]  ;;  %vm1684_vm1 = vcmask 1043456   ;;  %vm1695_vm2 = vcmask 3072   ;;  %p1818_p10 = scmp.ne.s32.totalorder %s1932_s24, 1 }
 0x162   : > { %v1016_v2 = vld [vmem:[%s2605_s19 + $0x2f0] sm:$0xff]  ;;  %1281 = vmatpush.msra.mxu0 %v952_v1  ;;  %v1014_v5 = vld [vmem:[%s2605_s19 + $0x2e0] sm:$0xff]  ;;  %s1880_s17 = smov (!%p1818_p10), 1  }
 0x163   : > { %1321 = vmatpush.msra.mxu2 %v1016_v2  ;;  %v984_v4 = vld [vmem:[%s2605_s19 + $0x1f0] sm:$0xff]  ;;  %v982_v8 = vld [vmem:[%s2605_s19 + $0x1e0] sm:$0xff] }
 0x164   : > { %v1048_v6 = vld [vmem:[%s2605_s19 + $0x3f0] sm:$0xff]  ;;  %1301 = vmatpush.msra.mxu1 %v984_v4  ;;  %1282 = vmatpush.msra.mxu0 %v950_v3  ;;  %v1046_v10 = vld [vmem:[%s2605_s19 + $0x3e0] sm:$0xff] }
 0x165   : > { %1341 = vmatpush.msra.mxu3 %v1048_v6  ;;  %v948_v7 = vld [vmem:[%s2605_s19 + $0xd0] sm:$0xff]  ;;  %1322 = vmatpush.msra.mxu2 %v1014_v5  ;;  %v946_v12 = vld [vmem:[%s2605_s19 + $0xc0] sm:$0xff] }
 0x166   : > { %v1012_v9 = vld [vmem:[%s2605_s19 + $0x2d0] sm:$0xff]  ;;  %1302 = vmatpush.msra.mxu1 %v982_v8  ;;  %v1010_v13 = vld [vmem:[%s2605_s19 + $0x2c0] sm:$0xff]  ;;  %1283 = vmatpush.msra.mxu0 %v948_v7 }
 0x167   : > { %v980_v11 = vld [vmem:[%s2605_s19 + $0x1d0] sm:$0xff]  ;;  %1342 = vmatpush.msra.mxu3 %v1046_v10  ;;  %1323 = vmatpush.msra.mxu2 %v1012_v9  ;;  %v978_v15 = vld [vmem:[%s2605_s19 + $0x1c0] sm:$0xff] }
 0x168   : > { %v1044_v14 = vld [vmem:[%s2605_s19 + $0x3d0] sm:$0xff]  ;;  %v1042_v16 = vld [vmem:[%s2605_s19 + $0x3c0] sm:$0xff]  ;;  %1303 = vmatpush.msra.mxu1 %v980_v11  ;;  %1284 = vmatpush.msra.mxu0 %v946_v12 }
 0x169   : > { %1343 = vmatpush.msra.mxu3 %v1044_v14  ;;  %v944_v17 = vld [vmem:[%s2605_s19 + $0xb0] sm:$0xff]  ;;  %1324 = vmatpush.msra.mxu2 %v1010_v13  ;;  %v942_v21 = vld [vmem:[%s2605_s19 + $0xa0] sm:$0xff] }
 0x16a   : > { %v1008_v18 = vld [vmem:[%s2605_s19 + $0x2b0] sm:$0xff]  ;;  %1304 = vmatpush.msra.mxu1 %v978_v15  ;;  %v1006_v22 = vld [vmem:[%s2605_s19 + $0x2a0] sm:$0xff]  ;;  %1285 = vmatpush.msra.mxu0 %v944_v17 }
 0x16b   : > { %v976_v19 = vld [vmem:[%s2605_s19 + $0x1b0] sm:$0xff]  ;;  %1344 = vmatpush.msra.mxu3 %v1042_v16  ;;  %1325 = vmatpush.msra.mxu2 %v1008_v18  ;;  %v974_v23 = vld [vmem:[%s2605_s19 + $0x1a0] sm:$0xff] }
 0x16c   : > { %v1040_v20 = vld [vmem:[%s2605_s19 + $0x3b0] sm:$0xff]  ;;  %v1038_v24 = vld [vmem:[%s2605_s19 + $0x3a0] sm:$0xff]  ;;  %1305 = vmatpush.msra.mxu1 %v976_v19  ;;  %1286 = vmatpush.msra.mxu0 %v942_v21 }
 0x16d   : > { %1345 = vmatpush.msra.mxu3 %v1040_v20  ;;  %v940_v25 = vld [vmem:[%s2605_s19 + $0x90] sm:$0xff]  ;;  %1326 = vmatpush.msra.mxu2 %v1006_v22  ;;  %v938_v29 = vld [vmem:[%s2605_s19 + $0x80] sm:$0xff] }
 0x16e   : > { %v1004_v26 = vld [vmem:[%s2605_s19 + $0x290] sm:$0xff]  ;;  %1306 = vmatpush.msra.mxu1 %v974_v23  ;;  %v1002_v30 = vld [vmem:[%s2605_s19 + $0x280] sm:$0xff]  ;;  %1287 = vmatpush.msra.mxu0 %v940_v25 }
 0x16f   : > { %v972_v27 = vld [vmem:[%s2605_s19 + $0x190] sm:$0xff]  ;;  %1346 = vmatpush.msra.mxu3 %v1038_v24  ;;  %1327 = vmatpush.msra.mxu2 %v1004_v26  ;;  %v970_v31 = vld [vmem:[%s2605_s19 + $0x180] sm:$0xff] }
 0x170   : > { %v1036_v28 = vld [vmem:[%s2605_s19 + $0x390] sm:$0xff]  ;;  %v1034_v32 = vld [vmem:[%s2605_s19 + $0x380] sm:$0xff]  ;;  %1307 = vmatpush.msra.mxu1 %v972_v27  ;;  %1288 = vmatpush.msra.mxu0 %v938_v29 }
 0x171   : > { %1347 = vmatpush.msra.mxu3 %v1036_v28  ;;  %v936_v33 = vld [vmem:[%s2605_s19 + $0x70] sm:$0xff]  ;;  %1328 = vmatpush.msra.mxu2 %v1002_v30  ;;  %v934_v37 = vld [vmem:[%s2605_s19 + $0x60] sm:$0xff]  ;;  %v918_v28 = vld [vmem:[%s3014_s1 + $0x8] sm:$0xff] }
 0x172   : > { %v1000_v34 = vld [vmem:[%s2605_s19 + $0x270] sm:$0xff]  ;;  %1308 = vmatpush.msra.mxu1 %v970_v31  ;;  %v998_v38 = vld [vmem:[%s2605_s19 + $0x260] sm:$0xff]  ;;  %1289 = vmatpush.msra.mxu0 %v936_v33  ;;  %1255 = vst [vmem:[#allocation1 + $0x10] ss:$2 sm:$0xff] %v918_v28  ;;  %v979_v28 = vld [vmem:[%s2605_s19 + $0x1c8] sm:$0xff] }
 0x173   : > { %v968_v35 = vld [vmem:[%s2605_s19 + $0x170] sm:$0xff]  ;;  %1348 = vmatpush.msra.mxu3 %v1034_v32  ;;  %1329 = vmatpush.msra.mxu2 %v1000_v34  ;;  %v966_v39 = vld [vmem:[%s2605_s19 + $0x160] sm:$0xff] }
 0x174   : > { %v1032_v36 = vld [vmem:[%s2605_s19 + $0x370] sm:$0xff]  ;;  %v1030_v40 = vld [vmem:[%s2605_s19 + $0x360] sm:$0xff]  ;;  %1309 = vmatpush.msra.mxu1 %v968_v35  ;;  %1290 = vmatpush.msra.mxu0 %v934_v37 }
 0x175   : > { %1349 = vmatpush.msra.mxu3 %v1032_v36  ;;  %v932_v41 = vld [vmem:[%s2605_s19 + $0x50] sm:$0xff]  ;;  %1330 = vmatpush.msra.mxu2 %v998_v38  ;;  %v930_v45 = vld [vmem:[%s2605_s19 + $0x40] sm:$0xff] }
 0x176   : > { %v996_v42 = vld [vmem:[%s2605_s19 + $0x250] sm:$0xff]  ;;  %1310 = vmatpush.msra.mxu1 %v966_v39  ;;  %v994_v46 = vld [vmem:[%s2605_s19 + $0x240] sm:$0xff]  ;;  %1291 = vmatpush.msra.mxu0 %v932_v41 }
 0x177   : > { %v964_v43 = vld [vmem:[%s2605_s19 + $0x150] sm:$0xff]  ;;  %1350 = vmatpush.msra.mxu3 %v1030_v40  ;;  %1331 = vmatpush.msra.mxu2 %v996_v42  ;;  %v962_v47 = vld [vmem:[%s2605_s19 + $0x140] sm:$0xff] }
 0x178   : > { %v1028_v44 = vld [vmem:[%s2605_s19 + $0x350] sm:$0xff]  ;;  %v1026_v48 = vld [vmem:[%s2605_s19 + $0x340] sm:$0xff]  ;;  %1311 = vmatpush.msra.mxu1 %v964_v43  ;;  %1292 = vmatpush.msra.mxu0 %v930_v45  ;;  %v920_v43 = vld [vmem:[%s3014_s1 + $0x18] sm:$0xff] }
 0x179   : > { %1351 = vmatpush.msra.mxu3 %v1028_v44  ;;  %v928_v49 = vld [vmem:[%s2605_s19 + $0x30] sm:$0xff]  ;;  %1332 = vmatpush.msra.mxu2 %v994_v46  ;;  %v926_v53 = vld [vmem:[%s2605_s19 + $0x20] sm:$0xff]  ;;  %1259 = vst [vmem:[#allocation1 + $0x30] ss:$2 sm:$0xff] %v920_v43 }
 0x17a   : > { %v992_v50 = vld [vmem:[%s2605_s19 + $0x230] sm:$0xff]  ;;  %1312 = vmatpush.msra.mxu1 %v962_v47  ;;  %v990_v54 = vld [vmem:[%s2605_s19 + $0x220] sm:$0xff]  ;;  %1293 = vmatpush.msra.mxu0 %v928_v49 }
 0x17b   : > { %v960_v51 = vld [vmem:[%s2605_s19 + $0x130] sm:$0xff]  ;;  %1352 = vmatpush.msra.mxu3 %v1026_v48  ;;  %1333 = vmatpush.msra.mxu2 %v992_v50  ;;  %v958_v55 = vld [vmem:[%s2605_s19 + $0x120] sm:$0xff] }
 0x17c   : > { %v1024_v52 = vld [vmem:[%s2605_s19 + $0x330] sm:$0xff]  ;;  %v1022_v56 = vld [vmem:[%s2605_s19 + $0x320] sm:$0xff]  ;;  %1313 = vmatpush.msra.mxu1 %v960_v51  ;;  %1294 = vmatpush.msra.mxu0 %v926_v53 }
 0x17d   : > { %1353 = vmatpush.msra.mxu3 %v1024_v52  ;;  %v924_v57 = vld [vmem:[%s2605_s19 + $0x10] sm:$0xff]  ;;  %1334 = vmatpush.msra.mxu2 %v990_v54  ;;  %v922_v61 = vld [vmem:[%s2605_s19] sm:$0xff] }
 0x17e   : > { %v988_v58 = vld [vmem:[%s2605_s19 + $0x210] sm:$0xff]  ;;  %1314 = vmatpush.msra.mxu1 %v958_v55  ;;  %v986_v62 = vld [vmem:[%s2605_s19 + $0x200] sm:$0xff]  ;;  %1295 = vmatpush.msra.mxu0 %v924_v57 }
 0x17f   : > { %v956_v59 = vld [vmem:[%s2605_s19 + $0x110] sm:$0xff]  ;;  %1354 = vmatpush.msra.mxu3 %v1022_v56  ;;  %1335 = vmatpush.msra.mxu2 %v988_v58  ;;  %v954_v1 = vld [vmem:[%s2605_s19 + $0x100] sm:$0xff] }
 0x180   : > { %v1020_v60 = vld [vmem:[%s2605_s19 + $0x310] sm:$0xff]  ;;  %1315 = vmatpush.msra.mxu1 %v956_v59  ;;  %v1018_v2 = vld [vmem:[%s2605_s19 + $0x300] sm:$0xff]  ;;  %1296 = vmatpush.msra.mxu0 %v922_v61 }
 0x181   : > { %v1080_v63 = vld [vmem:[%s2605_s19 + $0x4f0] sm:$0xff]  ;;  %1355 = vmatpush.msra.mxu3 %v1020_v60  ;;  %1336 = vmatpush.msra.mxu2 %v986_v62  ;;  %v1078_v3 = vld [vmem:[%s2605_s19 + $0x4e0] sm:$0xff] }
 0x182   : > { %v1144_v0 = vld [vmem:[%s2605_s19 + $0x6f0] sm:$0xff]  ;;  %1361 = vmatpush.msrb.mxu0 %v1080_v63  ;;  %v1142_v5 = vld [vmem:[%s2605_s19 + $0x6e0] sm:$0xff]  ;;  %1316 = vmatpush.msra.mxu1 %v954_v1 }
 0x183   : > { %v1112_v4 = vld [vmem:[%s2605_s19 + $0x5f0] sm:$0xff]  ;;  %1401 = vmatpush.msrb.mxu2 %v1144_v0  ;;  %1356 = vmatpush.msra.mxu3 %v1018_v2  ;;  %v1110_v8 = vld [vmem:[%s2605_s19 + $0x5e0] sm:$0xff] }
 0x184   : > { %v1176_v6 = vld [vmem:[%s2605_s19 + $0x7f0] sm:$0xff]  ;;  %1362 = vmatpush.msrb.mxu0 %v1078_v3  ;;  %1381 = vmatpush.msrb.mxu1 %v1112_v4  ;;  %v1174_v10 = vld [vmem:[%s2605_s19 + $0x7e0] sm:$0xff] }
 0x185   : > { %v1076_v7 = vld [vmem:[%s2605_s19 + $0x4d0] sm:$0xff]  ;;  %1402 = vmatpush.msrb.mxu2 %v1142_v5  ;;  %1421 = vmatpush.msrb.mxu3 %v1176_v6  ;;  %v1074_v11 = vld [vmem:[%s2605_s19 + $0x4c0] sm:$0xff] }
 0x186   : > { %v1140_v9 = vld [vmem:[%s2605_s19 + $0x6d0] sm:$0xff]  ;;  %1363 = vmatpush.msrb.mxu0 %v1076_v7  ;;  %1382 = vmatpush.msrb.mxu1 %v1110_v8  ;;  %v1138_v13 = vld [vmem:[%s2605_s19 + $0x6c0] sm:$0xff]  ;;  %v953_v8 = vld [vmem:[%s2605_s19 + $0xf8] sm:$0xff] }
 0x187   : > { %v1108_v12 = vld [vmem:[%s2605_s19 + $0x5d0] sm:$0xff]  ;;  %1403 = vmatpush.msrb.mxu2 %v1140_v9  ;;  %1422 = vmatpush.msrb.mxu3 %v1174_v10  ;;  %v1106_v16 = vld [vmem:[%s2605_s19 + $0x5c0] sm:$0xff] }
 0x188   : > { %v1172_v14 = vld [vmem:[%s2605_s19 + $0x7d0] sm:$0xff]  ;;  %1364 = vmatpush.msrb.mxu0 %v1074_v11  ;;  %1383 = vmatpush.msrb.mxu1 %v1108_v12  ;;  %v1170_v18 = vld [vmem:[%s2605_s19 + $0x7c0] sm:$0xff]  ;;  %v2761_v11 = vld.sshfl [vmem:[#allocation1 + $0x18] sm:$0xff pattern:$0x75316420] }
 0x189   : > { %v1072_v15 = vld [vmem:[%s2605_s19 + $0x4b0] sm:$0xff]  ;;  %1404 = vmatpush.msrb.mxu2 %v1138_v13  ;;  %1423 = vmatpush.msrb.mxu3 %v1172_v14  ;;  %v1070_v19 = vld [vmem:[%s2605_s19 + $0x4a0] sm:$0xff]  ;;  %v951_v14 = vld [vmem:[%s2605_s19 + $0xe8] sm:$0xff] }
 0x18a   : > { %v1136_v17 = vld [vmem:[%s2605_s19 + $0x6b0] sm:$0xff]  ;;  %1365 = vmatpush.msrb.mxu0 %v1072_v15  ;;  %1384 = vmatpush.msrb.mxu1 %v1106_v16  ;;  %v1134_v21 = vld [vmem:[%s2605_s19 + $0x6a0] sm:$0xff]  ;;  %v985_v15 = vld [vmem:[%s2605_s19 + $0x1f8] sm:$0xff] }
 0x18b   : > { %v1104_v20 = vld [vmem:[%s2605_s19 + $0x5b0] sm:$0xff]  ;;  %1405 = vmatpush.msrb.mxu2 %v1136_v17  ;;  %1424 = vmatpush.msrb.mxu3 %v1170_v18  ;;  %v1102_v24 = vld [vmem:[%s2605_s19 + $0x5a0] sm:$0xff]  ;;  %v949_v18 = vld [vmem:[%s2605_s19 + $0xd8] sm:$0xff] }
 0x18c   : > { %v1168_v22 = vld [vmem:[%s2605_s19 + $0x7b0] sm:$0xff]  ;;  %1366 = vmatpush.msrb.mxu0 %v1070_v19  ;;  %1385 = vmatpush.msrb.mxu1 %v1104_v20  ;;  %v1166_v26 = vld [vmem:[%s2605_s19 + $0x7a0] sm:$0xff]  ;;  %v983_v19 = vld [vmem:[%s2605_s19 + $0x1e8] sm:$0xff] }
 0x18d   : > { %v1068_v23 = vld [vmem:[%s2605_s19 + $0x490] sm:$0xff]  ;;  %1406 = vmatpush.msrb.mxu2 %v1134_v21  ;;  %1425 = vmatpush.msrb.mxu3 %v1168_v22  ;;  %v1066_v29 = vld [vmem:[%s2605_s19 + $0x480] sm:$0xff]  ;;  %v947_v22 = vld [vmem:[%s2605_s19 + $0xc8] sm:$0xff] }
 0x18e   : > { %v1132_v25 = vld [vmem:[%s2605_s19 + $0x690] sm:$0xff]  ;;  %1367 = vmatpush.msrb.mxu0 %v1068_v23  ;;  %1386 = vmatpush.msrb.mxu1 %v1102_v24  ;;  %v1130_v31 = vld [vmem:[%s2605_s19 + $0x680] sm:$0xff]  ;;  %v981_v23 = vld [vmem:[%s2605_s19 + $0x1d8] sm:$0xff] }
 0x18f   : > { %v917_v27 = vld [vmem:[%s3014_s1] sm:$0xff]  ;;  %1407 = vmatpush.msrb.mxu2 %v1132_v25  ;;  %1426 = vmatpush.msrb.mxu3 %v1166_v26  ;;  %v1098_v34 = vld [vmem:[%s2605_s19 + $0x580] sm:$0xff] }
 0x190   : > { %v1100_v30 = vld [vmem:[%s2605_s19 + $0x590] sm:$0xff]  ;;  %1253 = vst [vmem:[#allocation1] ss:$2 sm:$0xff] %v917_v27  ;;  %1368 = vmatpush.msrb.mxu0 %v1066_v29  ;;  %v1162_v36 = vld [vmem:[%s2605_s19 + $0x780] sm:$0xff]  ;;  %1357 = vmatmul.f32.vlgmr.msra.gmra.mxu3 %v2761_v11  ;;  %v945_v27 = vld [vmem:[%s2605_s19 + $0xb8] sm:$0xff] }
 0x191   : > { %v1164_v32 = vld [vmem:[%s2605_s19 + $0x790] sm:$0xff]  ;;  %1387 = vmatpush.msrb.mxu1 %v1100_v30  ;;  %v1062_v37 = vld [vmem:[%s2605_s19 + $0x460] sm:$0xff]  ;;  %1408 = vmatpush.msrb.mxu2 %v1130_v31  ;;  %v2786_v30 = vld.sshfl [vmem:[#allocation1 + $0x38] sm:$0xff pattern:$0x75316420] }
 0x192   : > { %v1064_v33 = vld [vmem:[%s2605_s19 + $0x470] sm:$0xff]  ;;  %1427 = vmatpush.msrb.mxu3 %v1164_v32  ;;  %v1126_v39 = vld [vmem:[%s2605_s19 + $0x660] sm:$0xff] }
 0x193   : > { %v1128_v35 = vld [vmem:[%s2605_s19 + $0x670] sm:$0xff]  ;;  %1369 = vmatpush.msrb.mxu0 %v1064_v33  ;;  %1388 = vmatpush.msrb.mxu1 %v1098_v34  ;;  %v1094_v44 = vld [vmem:[%s2605_s19 + $0x560] sm:$0xff]  ;;  %v943_v33 = vld [vmem:[%s2605_s19 + $0xa8] sm:$0xff] }
 0x194   : > { %v1096_v38 = vld [vmem:[%s2605_s19 + $0x570] sm:$0xff]  ;;  %1409 = vmatpush.msrb.mxu2 %v1128_v35  ;;  %1428 = vmatpush.msrb.mxu3 %v1162_v36  ;;  %v1158_v46 = vld [vmem:[%s2605_s19 + $0x760] sm:$0xff]  ;;  %v977_v34 = vld [vmem:[%s2605_s19 + $0x1b8] sm:$0xff] }
 0x195   : > { %v1160_v40 = vld [vmem:[%s2605_s19 + $0x770] sm:$0xff]  ;;  %1370 = vmatpush.msrb.mxu0 %v1062_v37  ;;  %1389 = vmatpush.msrb.mxu1 %v1096_v38  ;;  %v1058_v49 = vld [vmem:[%s2605_s19 + $0x440] sm:$0xff]  ;;  %v941_v38 = vld [vmem:[%s2605_s19 + $0x98] sm:$0xff] }
 0x196   : > { %v1060_v41 = vld [vmem:[%s2605_s19 + $0x450] sm:$0xff]  ;;  %1410 = vmatpush.msrb.mxu2 %v1126_v39  ;;  %1429 = vmatpush.msrb.mxu3 %v1160_v40  ;;  %v919_v51 = vld [vmem:[%s3014_s1 + $0x10] sm:$0xff]  ;;  %v1879_v39 = vmov 0   ;;  %v975_v40 = vld [vmem:[%s2605_s19 + $0x1a8] sm:$0xff] }
 0x197   : > { %v921_v42 = vld [vmem:[%s3014_s1 + $0x20] sm:$0xff]  ;;  %v2728_v48 = vld.sshfl [vmem:[#allocation1 + $0x8] sm:$0xff pattern:$0x75316420]  ;;  %1371 = vmatpush.msrb.mxu0 %v1060_v41  ;;  %1390 = vmatpush.msrb.mxu1 %v1094_v44  ;;  %v1122_v52 = vld [vmem:[%s2605_s19 + $0x640] sm:$0xff] }
 0x198   : > { %v1124_v45 = vld [vmem:[%s2605_s19 + $0x650] sm:$0xff]  ;;  %1257 = vst [vmem:[#allocation1 + $0x20] ss:$2 sm:$0xff] %v919_v51  ;;  %1430 = vmatpush.msrb.mxu3 %v1158_v46  ;;  %v1090_v55 = vld [vmem:[%s2605_s19 + $0x540] sm:$0xff]  ;;  %1317 = vmatmul.f32.vlgmr.msra.gmra.mxu1 %v2728_v48  ;;  %v939_v44 = vld [vmem:[%s2605_s19 + $0x88] sm:$0xff] }
 0x199   : > { %v2726_v47 = vld.sshfl [vmem:[#allocation1] sm:$0xff pattern:$0x75316420]  ;;  %1411 = vmatpush.msrb.mxu2 %v1124_v45  ;;  %1372 = vmatpush.msrb.mxu0 %v1058_v49  ;;  %v1154_v57 = vld [vmem:[%s2605_s19 + $0x740] sm:$0xff]  ;;  %v973_v45 = vld [vmem:[%s2605_s19 + $0x198] sm:$0xff] }
 0x19a   : > { %v1092_v50 = vld [vmem:[%s2605_s19 + $0x550] sm:$0xff]  ;;  %1268 = vst [vmem:[#allocation1] ss:$2 sm:$0xff] %v921_v42  ;;  %v1054_v58 = vld [vmem:[%s2605_s19 + $0x420] sm:$0xff]  ;;  %1297 = vmatmul.f32.vlgmr.msra.gmra.mxu0 %v2726_v47  ;;  %1851 = vset.pattern.permute.xlu0 %v1879_v39  ;;  %v971_v51 = vld [vmem:[%s2605_s19 + $0x188] sm:$0xff] }
 0x19b   : > { %v1156_v53 = vld [vmem:[%s2605_s19 + $0x750] sm:$0xff]  ;;  %1391 = vmatpush.msrb.mxu1 %v1092_v50  ;;  %1412 = vmatpush.msrb.mxu2 %v1122_v52  ;;  %v1118_v60 = vld [vmem:[%s2605_s19 + $0x620] sm:$0xff]  ;;  %v937_v50 = vld [vmem:[%s2605_s19 + $0x78] sm:$0xff] }
 0x19c   : > { %v1056_v54 = vld [vmem:[%s2605_s19 + $0x430] sm:$0xff]  ;;  %1431 = vmatpush.msrb.mxu3 %v1156_v53  ;;  %v1086_v63 = vld [vmem:[%s2605_s19 + $0x520] sm:$0xff]  ;;  %v1109_v39 = vld [vmem:[%s2605_s19 + $0x5d8] sm:$0xff] }
 0x19d   : > { %v1120_v56 = vld [vmem:[%s2605_s19 + $0x630] sm:$0xff]  ;;  %1373 = vmatpush.msrb.mxu0 %v1056_v54  ;;  %1392 = vmatpush.msrb.mxu1 %v1090_v55  ;;  %v1150_v1 = vld [vmem:[%s2605_s19 + $0x720] sm:$0xff]  ;;  %v935_v54 = vld [vmem:[%s2605_s19 + $0x68] sm:$0xff] }
 0x19e   : > { %v1088_v59 = vld [vmem:[%s2605_s19 + $0x530] sm:$0xff]  ;;  %1413 = vmatpush.msrb.mxu2 %v1120_v56  ;;  %1432 = vmatpush.msrb.mxu3 %v1154_v57  ;;  %v1050_v2 = vld [vmem:[%s2605_s19 + $0x400] sm:$0xff]  ;;  %v969_v55 = vld [vmem:[%s2605_s19 + $0x178] sm:$0xff] }
 0x19f   : > { %v1152_v61 = vld [vmem:[%s2605_s19 + $0x730] sm:$0xff]  ;;  %1374 = vmatpush.msrb.mxu0 %v1054_v58  ;;  %1393 = vmatpush.msrb.mxu1 %v1088_v59  ;;  %v1114_v4 = vld [vmem:[%s2605_s19 + $0x600] sm:$0xff]  ;;  %v2794_v35 = vld.sshfl [vmem:[#allocation1 + $0x28] sm:$0xff pattern:$0x75316420] }
 0x1a0   : > { %v1052_v62 = vld [vmem:[%s2605_s19 + $0x410] sm:$0xff]  ;;  %1414 = vmatpush.msrb.mxu2 %v1118_v60  ;;  %1433 = vmatpush.msrb.mxu3 %v1152_v61  ;;  %v2753_v6 = vld.sshfl [vmem:[#allocation1 + $0x10] sm:$0xff pattern:$0x75316420]  ;;  %v933_v58 = vld [vmem:[%s2605_s19 + $0x58] sm:$0xff] }
 0x1a1   : > { %v1116_v0 = vld [vmem:[%s2605_s19 + $0x610] sm:$0xff]  ;;  %1375 = vmatpush.msrb.mxu0 %v1052_v62  ;;  %1394 = vmatpush.msrb.mxu1 %v1086_v63  ;;  %v1082_v9 = vld [vmem:[%s2605_s19 + $0x500] sm:$0xff]  ;;  %v967_v59 = vld [vmem:[%s2605_s19 + $0x168] sm:$0xff] }
 0x1a2   : > { %v1084_v3 = vld [vmem:[%s2605_s19 + $0x510] sm:$0xff]  ;;  %1415 = vmatpush.msrb.mxu2 %v1116_v0  ;;  %1434 = vmatpush.msrb.mxu3 %v1150_v1  ;;  %v1146_v10 = vld [vmem:[%s2605_s19 + $0x700] sm:$0xff]  ;;  %v931_v62 = vld [vmem:[%s2605_s19 + $0x48] sm:$0xff] }
 0x1a3   : > { %v1148_v5 = vld [vmem:[%s2605_s19 + $0x710] sm:$0xff]  ;;  %1376 = vmatpush.msrb.mxu0 %v1050_v2  ;;  %1395 = vmatpush.msrb.mxu1 %v1084_v3  ;;  %v1206_v12 = vld [vmem:[%s2605_s19 + $0x8e0] sm:$0xff]  ;;  %v965_v63 = vld [vmem:[%s2605_s19 + $0x158] sm:$0xff] }
 0x1a4   : > { %v1208_v7 = vld [vmem:[%s2605_s19 + $0x8f0] sm:$0xff]  ;;  %1416 = vmatpush.msrb.mxu2 %v1114_v4  ;;  %1435 = vmatpush.msrb.mxu3 %v1148_v5  ;;  %v1238_v17 = vld [vmem:[%s2605_s19 + $0x9e0] sm:$0xff]  ;;  %v929_v2 = vld [vmem:[%s2605_s19 + $0x38] sm:$0xff] }
 0x1a5   : > { %1337 = vmatmul.f32.vlgmr.msra.gmra.mxu2 %v2753_v6  ;;  %1441 = vmatpush.msra.mxu0 %v1208_v7  ;;  %v1240_v13 = vld [vmem:[%s2605_s19 + $0x9f0] sm:$0xff]  ;;  %v1202_v20 = vld [vmem:[%s2605_s19 + $0x8c0] sm:$0xff]  ;;  %v963_v3 = vld [vmem:[%s2605_s19 + $0x148] sm:$0xff] }
 0x1a6   : > { %1481 = vmatpush.msra.mxu2 %v953_v8  ;;  %1396 = vmatpush.msrb.mxu1 %v1082_v9  ;;  %v1204_v16 = vld [vmem:[%s2605_s19 + $0x8d0] sm:$0xff]  ;;  %v2777_v24 = vld.sshfl [vmem:[#allocation1 + $0x30] sm:$0xff pattern:$0x75316420]  ;;  %v927_v7 = vld [vmem:[%s2605_s19 + $0x28] sm:$0xff] }
 0x1a7   : > { %1436 = vmatpush.msrb.mxu3 %v1146_v10  ;;  %1442 = vmatpush.msra.mxu0 %v1206_v12  ;;  %v1236_v21 = vld [vmem:[%s2605_s19 + $0x9d0] sm:$0xff]  ;;  %v1234_v26 = vld [vmem:[%s2605_s19 + $0x9c0] sm:$0xff]  ;;  %v961_v8 = vld [vmem:[%s2605_s19 + $0x138] sm:$0xff] }
 0x1a8   : > { %1461 = vmatpush.msra.mxu1 %v1240_v13  ;;  %1482 = vmatpush.msra.mxu2 %v951_v14  ;;  %v1200_v25 = vld [vmem:[%s2605_s19 + $0x8b0] sm:$0xff]  ;;  %v1198_v31 = vld [vmem:[%s2605_s19 + $0x8a0] sm:$0xff]  ;;  %v925_v12 = vld [vmem:[%s2605_s19 + $0x18] sm:$0xff] }
 0x1a9   : > { %1501 = vmatpush.msra.mxu3 %v985_v15  ;;  %1443 = vmatpush.msra.mxu0 %v1204_v16  ;;  %v2783_v29 = vld.sshfl [vmem:[#allocation1 + $0x20] sm:$0xff pattern:$0x75316420]  ;;  %v1230_v37 = vld [vmem:[%s2605_s19 + $0x9a0] sm:$0xff]  ;;  %v959_v13 = vld [vmem:[%s2605_s19 + $0x128] sm:$0xff] }
 0x1aa   : > { %1462 = vmatpush.msra.mxu1 %v1238_v17  ;;  %1483 = vmatpush.msra.mxu2 %v949_v18  ;;  %v1232_v32 = vld [vmem:[%s2605_s19 + $0x9b0] sm:$0xff]  ;;  %v1194_v42 = vld [vmem:[%s2605_s19 + $0x880] sm:$0xff]  ;;  %v923_v16 = vld [vmem:[%s2605_s19 + $0x8] sm:$0xff] }
 0x1ab   : > { %1502 = vmatpush.msra.mxu3 %v983_v19  ;;  %1444 = vmatpush.msra.mxu0 %v1202_v20  ;;  %v1196_v36 = vld [vmem:[%s2605_s19 + $0x890] sm:$0xff]  ;;  %v1226_v49 = vld [vmem:[%s2605_s19 + $0x980] sm:$0xff]  ;;  %v957_v17 = vld [vmem:[%s2605_s19 + $0x118] sm:$0xff] }
 0x1ac   : > { %1463 = vmatpush.msra.mxu1 %v1236_v21  ;;  %1484 = vmatpush.msra.mxu2 %v947_v22  ;;  %v1242_v41 = vld [vmem:[%s3015_s2] sm:$0xf]  ;;  %v1190_v52 = vld [vmem:[%s2605_s19 + $0x860] sm:$0xff]  ;;  %v1081_v19 = vld [vmem:[%s2605_s19 + $0x4f8] sm:$0xff] }
 0x1ad   : > { %1503 = vmatpush.msra.mxu3 %v981_v23  ;;  %1417 = vmatmul.f32.vlgmr.msrb.gmra.mxu2 %v2777_v24  ;;  %v1228_v43 = vld [vmem:[%s2605_s19 + $0x990] sm:$0xff]  ;;  %v1222_v57 = vld [vmem:[%s2605_s19 + $0x960] sm:$0xff]  ;;  %v1017_v20 = vld [vmem:[%s2605_s19 + $0x2f8] sm:$0xff] }
 0x1ae   : > { %1445 = vmatpush.msra.mxu0 %v1200_v25  ;;  %1464 = vmatpush.msra.mxu1 %v1234_v26  ;;  %v1192_v46 = vld [vmem:[%s2605_s19 + $0x870] sm:$0xff]  ;;  %v1186_v60 = vld [vmem:[%s2605_s19 + $0x840] sm:$0xff]  ;;  %v955_v22 = vld [vmem:[%s2605_s19 + $0x108] sm:$0xff] }
 0x1af   : > { %1485 = vmatpush.msra.mxu2 %v945_v27  ;;  %1504 = vmatpush.msra.mxu3 %v979_v28  ;;  %v1224_v53 = vld [vmem:[%s2605_s19 + $0x970] sm:$0xff]  ;;  %v1218_v1 = vld [vmem:[%s2605_s19 + $0x940] sm:$0xff]  ;;  %v2846_v23 = vld.sshfl [vmem:[#allocation1 + $0x8] sm:$0xff pattern:$0x75316420] }
 0x1b0   : > { %1377 = vmatmul.f32.vlgmr.msrb.gmra.mxu0 %v2783_v29  ;;  %1437 = vmatmul.f32.vlgmr.msrb.gmra.mxu3 %v2786_v30  ;;  %v1188_v56 = vld [vmem:[%s2605_s19 + $0x850] sm:$0xff]  ;;  %v1182_v4 = vld [vmem:[%s2605_s19 + $0x820] sm:$0xff]  ;;  %v1015_v25 = vld [vmem:[%s2605_s19 + $0x2e8] sm:$0xff] }
 0x1b1   : > { %1446 = vmatpush.msra.mxu0 %v1198_v31  ;;  %1465 = vmatpush.msra.mxu1 %v1232_v32  ;;  %v1220_v61 = vld [vmem:[%s2605_s19 + $0x950] sm:$0xff]  ;;  %v1214_v10 = vld [vmem:[%s2605_s19 + $0x920] sm:$0xff]  ;;  %v1049_v26 = vld [vmem:[%s2605_s19 + $0x3f8] sm:$0xff] }
 0x1b2   : > { %1486 = vmatpush.msra.mxu2 %v943_v33  ;;  %1505 = vmatpush.msra.mxu3 %v977_v34  ;;  %v1184_v0 = vld [vmem:[%s2605_s19 + $0x830] sm:$0xff]  ;;  %v1178_v14 = vld [vmem:[%s2605_s19 + $0x800] sm:$0xff]  ;;  %v1079_v27 = vld [vmem:[%s2605_s19 + $0x4e8] sm:$0xff] }
 0x1b3   : > { %1397 = vmatmul.f32.vlgmr.msrb.gmra.mxu1 %v2794_v35  ;;  %1447 = vmatpush.msra.mxu0 %v1196_v36  ;;  %v1216_v5 = vld [vmem:[%s2605_s19 + $0x930] sm:$0xff]  ;;  %v1210_v21 = vld [vmem:[%s2605_s19 + $0x900] sm:$0xff]  ;;  %v1113_v28 = vld [vmem:[%s2605_s19 + $0x5f8] sm:$0xff] }
 0x1b4   : > { %1466 = vmatpush.msra.mxu1 %v1230_v37  ;;  %1487 = vmatpush.msra.mxu2 %v941_v38  ;;  %v1180_v9 = vld [vmem:[%s2605_s19 + $0x810] sm:$0xff]  ;;  %v1013_v31 = vld [vmem:[%s2605_s19 + $0x2d8] sm:$0xff]  ;;  %v1047_v32 = vld [vmem:[%s2605_s19 + $0x3e8] sm:$0xff] }
 0x1b5   : > { %1506 = vmatpush.msra.mxu3 %v975_v40  ;;  %1245 = vperm.xlu0 %1851, %v1242_v41   ;;  %v1212_v15 = vld [vmem:[%s2605_s19 + $0x910] sm:$0xff]  ;;  %v1077_v33 = vld [vmem:[%s2605_s19 + $0x4d8] sm:$0xff]  ;;  %v1111_v34 = vld [vmem:[%s2605_s19 + $0x5e8] sm:$0xff] }
 0x1b6   : > { %1448 = vmatpush.msra.mxu0 %v1194_v42  ;;  %1467 = vmatpush.msra.mxu1 %v1228_v43  ;;  %v2840_v18 = vld.sshfl [vmem:[#allocation1] sm:$0xff pattern:$0x75316420]  ;;  %v1011_v36 = vld [vmem:[%s2605_s19 + $0x2c8] sm:$0xff]  ;;  %v1045_v37 = vld [vmem:[%s2605_s19 + $0x3d8] sm:$0xff] }
 0x1b7   : > { %1488 = vmatpush.msra.mxu2 %v939_v44  ;;  %1507 = vmatpush.msra.mxu3 %v973_v45  ;;  %v1075_v38 = vld [vmem:[%s2605_s19 + $0x4c8] sm:$0xff]  ;;  %v1009_v40 = vld [vmem:[%s2605_s19 + $0x2b8] sm:$0xff] }
 0x1b8   : > { %1449 = vmatpush.msra.mxu0 %v1192_v46  ;;  %1468 = vmatpush.msra.mxu1 %v1226_v49  ;;  %v1043_v41 = vld [vmem:[%s2605_s19 + $0x3c8] sm:$0xff]  ;;  %v1073_v42 = vld [vmem:[%s2605_s19 + $0x4b8] sm:$0xff] }
 0x1b9   : > { %1489 = vmatpush.msra.mxu2 %v937_v50  ;;  %1508 = vmatpush.msra.mxu3 %v971_v51  ;;  %v1107_v43 = vld [vmem:[%s2605_s19 + $0x5c8] sm:$0xff]  ;;  %v1041_v45 = vld [vmem:[%s2605_s19 + $0x3b8] sm:$0xff] }
 0x1ba   : > { %1450 = vmatpush.msra.mxu0 %v1190_v52  ;;  %1469 = vmatpush.msra.mxu1 %v1224_v53  ;;  %v1007_v44 = vld [vmem:[%s2605_s19 + $0x2a8] sm:$0xff]  ;;  %v1105_v49 = vld [vmem:[%s2605_s19 + $0x5b8] sm:$0xff] }
 0x1bb   : > { %1490 = vmatpush.msra.mxu2 %v935_v54  ;;  %1509 = vmatpush.msra.mxu3 %v969_v55  ;;  %v1071_v46 = vld [vmem:[%s2605_s19 + $0x4a8] sm:$0xff]  ;;  %v1005_v50 = vld [vmem:[%s2605_s19 + $0x298] sm:$0xff] }
 0x1bc   : > { %1451 = vmatpush.msra.mxu0 %v1188_v56  ;;  %1470 = vmatpush.msra.mxu1 %v1222_v57  ;;  %v1039_v51 = vld [vmem:[%s2605_s19 + $0x3a8] sm:$0xff]  ;;  %v1069_v52 = vld [vmem:[%s2605_s19 + $0x498] sm:$0xff] }
 0x1bd   : > { %1491 = vmatpush.msra.mxu2 %v933_v58  ;;  %1510 = vmatpush.msra.mxu3 %v967_v59  ;;  %v1103_v53 = vld [vmem:[%s2605_s19 + $0x5a8] sm:$0xff]  ;;  %v1037_v55 = vld [vmem:[%s2605_s19 + $0x398] sm:$0xff] }
 0x1be   : > { %1452 = vmatpush.msra.mxu0 %v1186_v60  ;;  %1471 = vmatpush.msra.mxu1 %v1220_v61  ;;  %v1003_v54 = vld [vmem:[%s2605_s19 + $0x288] sm:$0xff]  ;;  %v1101_v57 = vld [vmem:[%s2605_s19 + $0x598] sm:$0xff] }
 0x1bf   : > { %1492 = vmatpush.msra.mxu2 %v931_v62  ;;  %1511 = vmatpush.msra.mxu3 %v965_v63  ;;  %v1067_v56 = vld [vmem:[%s2605_s19 + $0x488] sm:$0xff]  ;;  %v1001_v58 = vld [vmem:[%s2605_s19 + $0x278] sm:$0xff] }
 0x1c0   : > { %1453 = vmatpush.msra.mxu0 %v1184_v0  ;;  %1472 = vmatpush.msra.mxu1 %v1218_v1  ;;  %v1035_v59 = vld [vmem:[%s2605_s19 + $0x388] sm:$0xff]  ;;  %v1065_v60 = vld [vmem:[%s2605_s19 + $0x478] sm:$0xff] }
 0x1c1   : > { %1493 = vmatpush.msra.mxu2 %v929_v2  ;;  %1512 = vmatpush.msra.mxu3 %v963_v3  ;;  %v1099_v61 = vld [vmem:[%s2605_s19 + $0x588] sm:$0xff]  ;;  %v1033_v63 = vld [vmem:[%s2605_s19 + $0x378] sm:$0xff] }
 0x1c2   : > { %1454 = vmatpush.msra.mxu0 %v1182_v4  ;;  %1473 = vmatpush.msra.mxu1 %v1216_v5  ;;  %v999_v62 = vld [vmem:[%s2605_s19 + $0x268] sm:$0xff]  ;;  %v1097_v1 = vld [vmem:[%s2605_s19 + $0x578] sm:$0xff] }
 0x1c3   : > { %1494 = vmatpush.msra.mxu2 %v927_v7  ;;  %1513 = vmatpush.msra.mxu3 %v961_v8  ;;  %v1063_v0 = vld [vmem:[%s2605_s19 + $0x468] sm:$0xff]  ;;  %v997_v2 = vld [vmem:[%s2605_s19 + $0x258] sm:$0xff] }
 0x1c4   : > { %1455 = vmatpush.msra.mxu0 %v1180_v9  ;;  %1474 = vmatpush.msra.mxu1 %v1214_v10  ;;  %v1031_v3 = vld [vmem:[%s2605_s19 + $0x368] sm:$0xff]  ;;  %v1061_v4 = vld [vmem:[%s2605_s19 + $0x458] sm:$0xff] }
 0x1c5   : > { %1495 = vmatpush.msra.mxu2 %v925_v12  ;;  %1514 = vmatpush.msra.mxu3 %v959_v13  ;;  %v1095_v5 = vld [vmem:[%s2605_s19 + $0x568] sm:$0xff]  ;;  %v1029_v8 = vld [vmem:[%s2605_s19 + $0x358] sm:$0xff] }
 0x1c6   : > { %1456 = vmatpush.msra.mxu0 %v1178_v14  ;;  %1475 = vmatpush.msra.mxu1 %v1212_v15  ;;  %v995_v7 = vld [vmem:[%s2605_s19 + $0x248] sm:$0xff]  ;;  %v1093_v10 = vld [vmem:[%s2605_s19 + $0x558] sm:$0xff] }
 0x1c7   : > { %1496 = vmatpush.msra.mxu2 %v923_v16  ;;  %1515 = vmatpush.msra.mxu3 %v957_v17  ;;  %v1059_v9 = vld [vmem:[%s2605_s19 + $0x448] sm:$0xff]  ;;  %v993_v12 = vld [vmem:[%s2605_s19 + $0x238] sm:$0xff] }
 0x1c8   : > { %1457 = vmatmul.f32.vlgmr.msra.gmra.mxu0 %v2840_v18  ;;  %1476 = vmatpush.msra.mxu1 %v1210_v21  ;;  %v1027_v13 = vld [vmem:[%s2605_s19 + $0x348] sm:$0xff]  ;;  %v1057_v14 = vld [vmem:[%s2605_s19 + $0x438] sm:$0xff] }
 0x1c9   : > { %1561 = vmatpush.msrb.mxu2 %v1081_v19  ;;  %1521 = vmatpush.msrb.mxu0 %v1017_v20  ;;  %v1091_v15 = vld [vmem:[%s2605_s19 + $0x548] sm:$0xff]  ;;  %v1025_v17 = vld [vmem:[%s2605_s19 + $0x338] sm:$0xff] }
 0x1ca   : > { %1516 = vmatpush.msra.mxu3 %v955_v22  ;;  %1477 = vmatmul.f32.vlgmr.msra.gmra.mxu1 %v2846_v23  ;;  %v991_v16 = vld [vmem:[%s2605_s19 + $0x228] sm:$0xff]  ;;  %v1089_v20 = vld [vmem:[%s2605_s19 + $0x538] sm:$0xff] }
 0x1cb   : > { %1522 = vmatpush.msrb.mxu0 %v1015_v25  ;;  %1541 = vmatpush.msrb.mxu1 %v1049_v26  ;;  %v1055_v19 = vld [vmem:[%s2605_s19 + $0x428] sm:$0xff]  ;;  %v989_v21 = vld [vmem:[%s2605_s19 + $0x218] sm:$0xff] }
 0x1cc   : > { %1562 = vmatpush.msrb.mxu2 %v1079_v27  ;;  %1581 = vmatpush.msrb.mxu3 %v1113_v28  ;;  %v1023_v22 = vld [vmem:[%s2605_s19 + $0x328] sm:$0xff]  ;;  %v1053_v25 = vld [vmem:[%s2605_s19 + $0x418] sm:$0xff] }
 0x1cd   : > { %1523 = vmatpush.msrb.mxu0 %v1013_v31  ;;  %1542 = vmatpush.msrb.mxu1 %v1047_v32  ;;  %v1087_v26 = vld [vmem:[%s2605_s19 + $0x528] sm:$0xff]  ;;  %v1021_v28 = vld [vmem:[%s2605_s19 + $0x318] sm:$0xff] }
 0x1ce   : > { %1563 = vmatpush.msrb.mxu2 %v1077_v33  ;;  %1582 = vmatpush.msrb.mxu3 %v1111_v34  ;;  %v987_v27 = vld [vmem:[%s2605_s19 + $0x208] sm:$0xff]  ;;  %v1085_v32 = vld [vmem:[%s2605_s19 + $0x518] sm:$0xff] }
 0x1cf   : > { %1524 = vmatpush.msrb.mxu0 %v1011_v36  ;;  %1543 = vmatpush.msrb.mxu1 %v1045_v37  ;;  %v1051_v31 = vld [vmem:[%s2605_s19 + $0x408] sm:$0xff]  ;;  %v1145_v33 = vld [vmem:[%s2605_s19 + $0x6f8] sm:$0xff] }
 0x1d0   : > { %1564 = vmatpush.msrb.mxu2 %v1075_v38  ;;  %1583 = vmatpush.msrb.mxu3 %v1109_v39  ;;  %v1209_v34 = vld [vmem:[%s2605_s19 + $0x8f8] sm:$0xff]  ;;  %v1019_v36 = vld [vmem:[%s2605_s19 + $0x308] sm:$0xff] }
 0x1d1   : > { %1525 = vmatpush.msrb.mxu0 %v1009_v40  ;;  %1544 = vmatpush.msrb.mxu1 %v1043_v41  ;;  %v1083_v37 = vld [vmem:[%s2605_s19 + $0x508] sm:$0xff]  ;;  %v1177_v39 = vld [vmem:[%s2605_s19 + $0x7f8] sm:$0xff] }
 0x1d2   : > { %1565 = vmatpush.msrb.mxu2 %v1073_v42  ;;  %1584 = vmatpush.msrb.mxu3 %v1107_v43  ;;  %v1143_v38 = vld [vmem:[%s2605_s19 + $0x6e8] sm:$0xff]  ;;  %v1241_v41 = vld [vmem:[%s2605_s19 + $0x9f8] sm:$0xff] }
 0x1d3   : > { %1526 = vmatpush.msrb.mxu0 %v1007_v44  ;;  %1545 = vmatpush.msrb.mxu1 %v1041_v45  ;;  %v1207_v40 = vld [vmem:[%s2605_s19 + $0x8e8] sm:$0xff]  ;;  %v1141_v42 = vld [vmem:[%s2605_s19 + $0x6d8] sm:$0xff] }
 0x1d4   : > { %1566 = vmatpush.msrb.mxu2 %v1071_v46  ;;  %1585 = vmatpush.msrb.mxu3 %v1105_v49  ;;  %v1175_v43 = vld [vmem:[%s2605_s19 + $0x7e8] sm:$0xff]  ;;  %v1173_v46 = vld [vmem:[%s2605_s19 + $0x7d8] sm:$0xff] }
 0x1d5   : > { %1527 = vmatpush.msrb.mxu0 %v1005_v50  ;;  %1546 = vmatpush.msrb.mxu1 %v1039_v51  ;;  %v1239_v44 = vld [vmem:[%s2605_s19 + $0x9e8] sm:$0xff]  ;;  %v1237_v50 = vld [vmem:[%s2605_s19 + $0x9d8] sm:$0xff] }
 0x1d6   : > { %1567 = vmatpush.msrb.mxu2 %v1069_v52  ;;  %1586 = vmatpush.msrb.mxu3 %v1103_v53  ;;  %v1139_v45 = vld [vmem:[%s2605_s19 + $0x6c8] sm:$0xff]  ;;  %v1201_v52 = vld [vmem:[%s2605_s19 + $0x8b8] sm:$0xff] }
 0x1d7   : > { %1528 = vmatpush.msrb.mxu0 %v1003_v54  ;;  %1547 = vmatpush.msrb.mxu1 %v1037_v55  ;;  %v1203_v49 = vld [vmem:[%s2605_s19 + $0x8c8] sm:$0xff]  ;;  %v1169_v55 = vld [vmem:[%s2605_s19 + $0x7b8] sm:$0xff] }
 0x1d8   : > { %1568 = vmatpush.msrb.mxu2 %v1067_v56  ;;  %1587 = vmatpush.msrb.mxu3 %v1101_v57  ;;  %v1171_v51 = vld [vmem:[%s2605_s19 + $0x7c8] sm:$0xff]  ;;  %v1233_v57 = vld [vmem:[%s2605_s19 + $0x9b8] sm:$0xff] }
 0x1d9   : > { %1529 = vmatpush.msrb.mxu0 %v1001_v58  ;;  %1548 = vmatpush.msrb.mxu1 %v1035_v59  ;;  %v1235_v53 = vld [vmem:[%s2605_s19 + $0x9c8] sm:$0xff]  ;;  %v1197_v59 = vld [vmem:[%s2605_s19 + $0x898] sm:$0xff] }
 0x1da   : > { %1569 = vmatpush.msrb.mxu2 %v1065_v60  ;;  %1588 = vmatpush.msrb.mxu3 %v1099_v61  ;;  %v1135_v54 = vld [vmem:[%s2605_s19 + $0x6a8] sm:$0xff]  ;;  %v1165_v61 = vld [vmem:[%s2605_s19 + $0x798] sm:$0xff] }
 0x1db   : > { %1530 = vmatpush.msrb.mxu0 %v999_v62  ;;  %1549 = vmatpush.msrb.mxu1 %v1033_v63  ;;  %v1199_v56 = vld [vmem:[%s2605_s19 + $0x8a8] sm:$0xff]  ;;  %v1229_v62 = vld [vmem:[%s2605_s19 + $0x998] sm:$0xff] }
 0x1dc   : > { %1570 = vmatpush.msrb.mxu2 %v1063_v0  ;;  %1589 = vmatpush.msrb.mxu3 %v1097_v1  ;;  %v1167_v58 = vld [vmem:[%s2605_s19 + $0x7a8] sm:$0xff]  ;;  %v1129_v63 = vld [vmem:[%s2605_s19 + $0x678] sm:$0xff] }
 0x1dd   : > { %1531 = vmatpush.msrb.mxu0 %v997_v2  ;;  %1550 = vmatpush.msrb.mxu1 %v1031_v3  ;;  %v1231_v60 = vld [vmem:[%s2605_s19 + $0x9a8] sm:$0xff]  ;;  %v1193_v1 = vld [vmem:[%s2605_s19 + $0x878] sm:$0xff] }
 0x1de   : > { %1571 = vmatpush.msrb.mxu2 %v1061_v4  ;;  %1590 = vmatpush.msrb.mxu3 %v1095_v5  ;;  %v1163_v0 = vld [vmem:[%s2605_s19 + $0x788] sm:$0xff]  ;;  %v1161_v3 = vld [vmem:[%s2605_s19 + $0x778] sm:$0xff] }
 0x1df   : > { %1532 = vmatpush.msrb.mxu0 %v995_v7  ;;  %1551 = vmatpush.msrb.mxu1 %v1029_v8  ;;  %v1127_v2 = vld [vmem:[%s2605_s19 + $0x668] sm:$0xff]  ;;  %v1225_v5 = vld [vmem:[%s2605_s19 + $0x978] sm:$0xff] }
 0x1e0   : > { %1572 = vmatpush.msrb.mxu2 %v1059_v9  ;;  %1591 = vmatpush.msrb.mxu3 %v1093_v10  ;;  %v1191_v4 = vld [vmem:[%s2605_s19 + $0x868] sm:$0xff]  ;;  %v1125_v7 = vld [vmem:[%s2605_s19 + $0x658] sm:$0xff] }
 0x1e1   : > { %1533 = vmatpush.msrb.mxu0 %v993_v12  ;;  %1552 = vmatpush.msrb.mxu1 %v1027_v13  ;;  %v1159_v8 = vld [vmem:[%s2605_s19 + $0x768] sm:$0xff]  ;;  %v1189_v9 = vld [vmem:[%s2605_s19 + $0x858] sm:$0xff] }
 0x1e2   : > { %1573 = vmatpush.msrb.mxu2 %v1057_v14  ;;  %1592 = vmatpush.msrb.mxu3 %v1091_v15  ;;  %v1223_v10 = vld [vmem:[%s2605_s19 + $0x968] sm:$0xff]  ;;  %v1157_v13 = vld [vmem:[%s2605_s19 + $0x758] sm:$0xff] }
 0x1e3   : > { %1534 = vmatpush.msrb.mxu0 %v991_v16  ;;  %1553 = vmatpush.msrb.mxu1 %v1025_v17  ;;  %v1123_v12 = vld [vmem:[%s2605_s19 + $0x648] sm:$0xff]  ;;  %v1221_v15 = vld [vmem:[%s2605_s19 + $0x958] sm:$0xff] }
 0x1e4   : > { %1574 = vmatpush.msrb.mxu2 %v1055_v19  ;;  %1593 = vmatpush.msrb.mxu3 %v1089_v20  ;;  %v1187_v14 = vld [vmem:[%s2605_s19 + $0x848] sm:$0xff]  ;;  %v1121_v16 = vld [vmem:[%s2605_s19 + $0x638] sm:$0xff] }
 0x1e5   : > { %1535 = vmatpush.msrb.mxu0 %v989_v21  ;;  %1554 = vmatpush.msrb.mxu1 %v1023_v22  ;;  %v1155_v17 = vld [vmem:[%s2605_s19 + $0x748] sm:$0xff]  ;;  %v1185_v19 = vld [vmem:[%s2605_s19 + $0x838] sm:$0xff] }
 0x1e6   : > { %1575 = vmatpush.msrb.mxu2 %v1053_v25  ;;  %1594 = vmatpush.msrb.mxu3 %v1087_v26  ;;  %v1219_v20 = vld [vmem:[%s2605_s19 + $0x948] sm:$0xff]  ;;  %v1153_v22 = vld [vmem:[%s2605_s19 + $0x738] sm:$0xff] }
 0x1e7   : > { %1536 = vmatpush.msrb.mxu0 %v987_v27  ;;  %1555 = vmatpush.msrb.mxu1 %v1021_v28  ;;  %v1119_v21 = vld [vmem:[%s2605_s19 + $0x628] sm:$0xff]  ;;  %v1217_v26 = vld [vmem:[%s2605_s19 + $0x938] sm:$0xff] }
 0x1e8   : > { %1576 = vmatpush.msrb.mxu2 %v1051_v31  ;;  %1595 = vmatpush.msrb.mxu3 %v1085_v32  ;;  %v1183_v25 = vld [vmem:[%s2605_s19 + $0x828] sm:$0xff]  ;;  %v1117_v27 = vld [vmem:[%s2605_s19 + $0x618] sm:$0xff] }
 0x1e9   : > { %1497 = vmatmul.f32.vlgmr.msra.gmra.mxu2 %v2726_v47  ;;  %1601 = vmatpush.msra.mxu0 %v1145_v33  ;;  %v1205_v47 = vld [vmem:[%s2605_s19 + $0x8d8] sm:$0xff]  ;;  %v1151_v28 = vld [vmem:[%s2605_s19 + $0x728] sm:$0xff] }
 0x1ea   : > { %1641 = vmatpush.msra.mxu2 %v1209_v34  ;;  %1556 = vmatpush.msrb.mxu1 %v1019_v36  ;;  %v1181_v31 = vld [vmem:[%s2605_s19 + $0x818] sm:$0xff]  ;;  %v1215_v32 = vld [vmem:[%s2605_s19 + $0x928] sm:$0xff] }
 0x1eb   : > { %1596 = vmatpush.msrb.mxu3 %v1083_v37  ;;  %1602 = vmatpush.msra.mxu0 %v1143_v38  ;;  %v1115_v33 = vld [vmem:[%s2605_s19 + $0x608] sm:$0xff]  ;;  %v1149_v34 = vld [vmem:[%s2605_s19 + $0x718] sm:$0xff] }
 0x1ec   : > { %1517 = vmatmul.f32.vlgmr.msra.gmra.mxu3 %v2728_v48  ;;  %1621 = vmatpush.msra.mxu1 %v1177_v39  ;;  %v1137_v48 = vld [vmem:[%s2605_s19 + $0x6b8] sm:$0xff]  ;;  %v1179_v36 = vld [vmem:[%s2605_s19 + $0x808] sm:$0xff] }
 0x1ed   : > { %1642 = vmatpush.msra.mxu2 %v1207_v40  ;;  %1661 = vmatpush.msra.mxu3 %v1241_v41  ;;  %v1213_v37 = vld [vmem:[%s2605_s19 + $0x918] sm:$0xff]  ;;  %v1147_v38 = vld [vmem:[%s2605_s19 + $0x708] sm:$0xff] }
 0x1ee   : > { %1603 = vmatpush.msra.mxu0 %v1141_v42  ;;  %1622 = vmatpush.msra.mxu1 %v1175_v43  ;;  %v1211_v39 = vld [vmem:[%s2605_s19 + $0x908] sm:$0xff] }
 0x1ef   : > { %1643 = vmatpush.msra.mxu2 %v1205_v47  ;;  %1662 = vmatpush.msra.mxu3 %v1239_v44 }
 0x1f0   : > { %1604 = vmatpush.msra.mxu0 %v1139_v45  ;;  %1623 = vmatpush.msra.mxu1 %v1173_v46 }
 0x1f1   : > { %1644 = vmatpush.msra.mxu2 %v1203_v49  ;;  %1663 = vmatpush.msra.mxu3 %v1237_v50 }
 0x1f2   : > { %1577 = vmatmul.f32.vlgmr.msrb.gmra.mxu2 %v2783_v29  ;;  %1605 = vmatpush.msra.mxu0 %v1137_v48  ;;  %v1133_v29 = vld [vmem:[%s2605_s19 + $0x698] sm:$0xff] }
 0x1f3   : > { %1624 = vmatpush.msra.mxu1 %v1171_v51  ;;  %1645 = vmatpush.msra.mxu2 %v1201_v52 }
 0x1f4   : > { %1664 = vmatpush.msra.mxu3 %v1235_v53  ;;  %1537 = vmatmul.f32.vlgmr.msrb.gmra.mxu0 %v2753_v6  ;;  %v1131_v6 = vld [vmem:[%s2605_s19 + $0x688] sm:$0xff] }
 0x1f5   : > { %1597 = vmatmul.f32.vlgmr.msrb.gmra.mxu3 %v2794_v35  ;;  %1606 = vmatpush.msra.mxu0 %v1135_v54  ;;  %v1195_v35 = vld [vmem:[%s2605_s19 + $0x888] sm:$0xff] }
 0x1f6   : > { %1625 = vmatpush.msra.mxu1 %v1169_v55  ;;  %1646 = vmatpush.msra.mxu2 %v1199_v56 }
 0x1f7   : > { %1665 = vmatpush.msra.mxu3 %v1233_v57  ;;  %1557 = vmatmul.f32.vlgmr.msrb.gmra.mxu1 %v2761_v11  ;;  %v1227_v11 = vld [vmem:[%s2605_s19 + $0x988] sm:$0xff] }
 0x1f8   : > { %1607 = vmatpush.msra.mxu0 %v1133_v29  ;;  %1626 = vmatpush.msra.mxu1 %v1167_v58 }
 0x1f9   : > { %1647 = vmatpush.msra.mxu2 %v1197_v59  ;;  %1666 = vmatpush.msra.mxu3 %v1231_v60 }
 0x1fa   : > { %1608 = vmatpush.msra.mxu0 %v1131_v6  ;;  %1627 = vmatpush.msra.mxu1 %v1165_v61 }
 0x1fb   : > { %1648 = vmatpush.msra.mxu2 %v1195_v35  ;;  %1667 = vmatpush.msra.mxu3 %v1229_v62 }
 0x1fc   : > { %1609 = vmatpush.msra.mxu0 %v1129_v63  ;;  %1628 = vmatpush.msra.mxu1 %v1163_v0 }
 0x1fd   : > { %1649 = vmatpush.msra.mxu2 %v1193_v1  ;;  %1668 = vmatpush.msra.mxu3 %v1227_v11 }
 0x1fe   : > { %1610 = vmatpush.msra.mxu0 %v1127_v2  ;;  %1629 = vmatpush.msra.mxu1 %v1161_v3 }
 0x1ff   : > { %1650 = vmatpush.msra.mxu2 %v1191_v4  ;;  %1669 = vmatpush.msra.mxu3 %v1225_v5 }
 0x200   : > { %1611 = vmatpush.msra.mxu0 %v1125_v7  ;;  %1630 = vmatpush.msra.mxu1 %v1159_v8 }
 0x201   : > { %1651 = vmatpush.msra.mxu2 %v1189_v9  ;;  %1670 = vmatpush.msra.mxu3 %v1223_v10 }
 0x202   : > { %1612 = vmatpush.msra.mxu0 %v1123_v12  ;;  %1631 = vmatpush.msra.mxu1 %v1157_v13 }
 0x203   : > { %1652 = vmatpush.msra.mxu2 %v1187_v14  ;;  %1671 = vmatpush.msra.mxu3 %v1221_v15 }
 0x204   : > { %1613 = vmatpush.msra.mxu0 %v1121_v16  ;;  %1632 = vmatpush.msra.mxu1 %v1155_v17 }
 0x205   : > { %1653 = vmatpush.msra.mxu2 %v1185_v19  ;;  %1672 = vmatpush.msra.mxu3 %v1219_v20 }
 0x206   : > { %1614 = vmatpush.msra.mxu0 %v1119_v21  ;;  %1633 = vmatpush.msra.mxu1 %v1153_v22  ;;  %v1688_v22 = vld [vmem:[#allocation2] sm:$0xf] }
 0x207   : > { %1654 = vmatpush.msra.mxu2 %v1183_v25  ;;  %1673 = vmatpush.msra.mxu3 %v1217_v26  ;;  %v1697_v26 = vld [vmem:[#allocation3] sm:$0xf] }
 0x208   : > { %1615 = vmatpush.msra.mxu0 %v1117_v27  ;;  %1634 = vmatpush.msra.mxu1 %v1151_v28 }
 0x209   : > { %1655 = vmatpush.msra.mxu2 %v1181_v31  ;;  %1674 = vmatpush.msra.mxu3 %v1215_v32 }
 0x20a   : > { %1616 = vmatpush.msra.mxu0 %v1115_v33  ;;  %1635 = vmatpush.msra.mxu1 %v1149_v34 }
 0x20b   : > { %1656 = vmatpush.msra.mxu2 %v1179_v36  ;;  %1675 = vmatpush.msra.mxu3 %v1213_v37 }
 0x20c   : > { %1617 = vmatmul.f32.vlgmr.msra.gmra.mxu0 %v2777_v24  ;;  %1657 = vmatmul.f32.vlgmr.msra.gmra.mxu2 %v2840_v18 }
 0x20d   : > { %1636 = vmatpush.msra.mxu1 %v1147_v38  ;;  %1676 = vmatpush.msra.mxu3 %v1211_v39 }
 0x20e   : > { %1637 = vmatmul.f32.vlgmr.msra.gmra.mxu1 %v2786_v30  ;;  %1677 = vmatmul.f32.vlgmr.msra.gmra.mxu3 %v2846_v23 }
 0x213   : > { %v1358_v43 = vpop.f32.mrf.mxu3 }
 0x215   : > { %v1318_v42 = vpop.f32.mrf.mxu1 }
 0x217   : > { %v1298_v40 = vpop.f32.mrf.mxu0 }
 0x227   : > { %v1246_v47 = vpop.permute.xlu0 %1245 }
 0x228   : > { %v1338_v41 = vpop.f32.mrf.mxu2  ;;  %v1299_v46 = vadd.f32 %v1298_v40, %v1246_v47 }
 0x22a   : > { %v1319_v48 = vadd.f32 %v1318_v42, %v1299_v46 }
 0x22c   : > { %v1339_v18 = vadd.f32 %v1338_v41, %v1319_v48 }
 0x22d   : > { %v1378_v44 = vpop.f32.mrf.mxu0 }
 0x22e   : > { %v1359_v30 = vadd.f32 %v1358_v43, %v1339_v18 }
 0x230   : > { %v1418_v45 = vpop.f32.mrf.mxu2  ;;  %v1398_v49 = vpop.f32.mrf.mxu1  ;;  %v1379_v56 = vadd.f32 %v1378_v44, %v1359_v30 }
 0x232   : > { %v1399_v58 = vadd.f32 %v1398_v49, %v1379_v56 }
 0x233   : > { %v1438_v50 = vpop.f32.mrf.mxu3 }
 0x234   : > { %v1419_v6 = vadd.f32 %v1418_v45, %v1399_v58 }
 0x236   : > { %v1439_v62 = vadd.f32 %v1438_v50, %v1419_v6 }
 0x245   : > { %v1458_v24 = vpop.f32.mrf.mxu0 }
 0x246   : > { %v1459_v1 = vadd.f32 %v1458_v24, %v1439_v62 }
 0x247   : > { %v1478_v53 = vpop.f32.mrf.mxu1 }
 0x248   : > { %v1479_v3 = vadd.f32 %v1478_v53, %v1459_v1 }
 0x24a   : > { %v1698_v10 = vmul.f32 %v1479_v3, %v1479_v3  ;;  %v1689_v13 = vsel %vm1684_vm1, %v1479_v3, 0.0 }
 0x24c   : > { %v1700_v19 = vsel %vm1684_vm1, %v1698_v10, 0.0 }
 0x26c   : > { %v1498_v51 = vpop.f32.mrf.mxu2 }
 0x26d   : > { %v1499_v52 = vadd.f32 %v1498_v51, %v1246_v47 }
 0x26f   : > { %v1518_v54 = vpop.f32.mrf.mxu3 }
 0x270   : > { %v1519_v55 = vadd.f32 %v1518_v54, %v1499_v52 }
 0x271   : > { %v1538_v23 = vpop.f32.mrf.mxu0 }
 0x272   : > { %v1539_v57 = vadd.f32 %v1538_v23, %v1519_v55 }
 0x274   : > { %v1558_v29 = vpop.f32.mrf.mxu1 }
 0x275   : > { %v1559_v59 = vadd.f32 %v1558_v29, %v1539_v57  ;;  %v1578_v60 = vpop.f32.mrf.mxu2 }
 0x277   : > { %v1579_v61 = vadd.f32 %v1578_v60, %v1559_v59 }
 0x278   : > { %v1598_v35 = vpop.f32.mrf.mxu3 }
 0x279   : > { %v1599_v63 = vadd.f32 %v1598_v35, %v1579_v61 }
 0x289   : > { %v1618_v0 = vpop.f32.mrf.mxu0 }
 0x28a   : > { %v1619_v11 = vadd.f32 %v1618_v0, %v1599_v63 }
 0x28b   : > { %v1638_v2 = vpop.f32.mrf.mxu1 }
 0x28c   : > { %v1639_v4 = vadd.f32 %v1638_v2, %v1619_v11 }
 0x28f   : > { %v1658_v5 = vpop.f32.mrf.mxu2 }
 0x290   : > { %v1659_v7 = vadd.f32 %v1658_v5, %v1639_v4 }
 0x291   : > { %v1678_v8 = vpop.f32.mrf.mxu3 }
 0x292   : > { %v1679_v9 = vadd.f32 %v1678_v8, %v1659_v7 }
 0x294   : > { %v1683_v12 = vrot.slane %v1679_v9, 4  ;;  %v1690_v14 = vsel %vm1684_vm1, %v1679_v9, 0.0  ;;  %v1699_v15 = vmul.f32 %v1679_v9, %v1679_v9 }
 0x295   : > { %v1691_v16 = vadd.f32 %v1690_v14, %v1689_v13 }
 0x296   : > { %v1685_v17 = vsel %vm1684_vm1, %v1479_v3, %v1683_v12  ;;  %v1701_v20 = vsel %vm1684_vm1, %v1699_v15, 0.0 }
 0x297   : > { %1692 = vadd.xlane.f32.xlu0 %v1691_v16  ;;  %1687 = vst [vmem:[%s2603_s18] sm:$0xff] %v1685_v17  ;;  %v1702_v21 = vadd.f32 %v1701_v20, %v1700_v19 }
 0x299   : > { %1703 = vadd.xlane.f32.xlu1 %v1702_v21 }
 0x30a   : > { %v1693_v25 = vpop.xlane.xlu0 %1692 }
 0x30b   : > { %v1694_v27 = vadd.f32 %v1693_v25, %v1688_v22  ;;  %1710 = sbr.rel (%p1818_p10) target bundleno = 937 (0x3a9), region = 71 }
 0x30c   : > { %v1704_v28 = vpop.xlane.xlu1 %1703 }
 0x30d   : > { %1696 = vst.msk [vmem:[#allocation2] sm:$0xf] %vm1695_vm2, %v1694_v27  ;;  %v1705_v31 = vadd.f32 %v1704_v28, %v1697_v26 }
 0x30f   : > { %1706 = vst.msk [vmem:[#allocation3] sm:$0xf] %vm1695_vm2, %v1705_v31 }
 0x310   : > { %v1717_v44 = vld [vmem:[%s3016_s3] sm:$0xf]  ;;  %vm1738_vm6 = vcmask 11272  }
 0x311   : > { %v1730_v50 = vld [vmem:[%s3017_s4] sm:$0xf] }
 0x314   : > { %v1711_v32 = vld [vmem:[#allocation2] sm:$0xf] }
 0x315   : > { %v1712_v34 = vmul.f32 0.001953125, %v1711_v32 }
 0x316   : > { %v1713_v33 = vld [vmem:[#allocation3] sm:$0xf] }
 0x317   : > { %v1714_v36 = vmul.f32 0.001953125, %v1713_v33  ;;  %v1715_v37 = vmul.f32 %v1712_v34, %v1712_v34 }
 0x319   : > { %v1716_v38 = vsub.f32 %v1714_v36, %v1715_v37 }
 0x31b   : > { %v1718_v39 = vadd.f32 1e-05, %v1716_v38 }
 0x31d   : > { %1852 = vrsqrt.f32 %v1718_v39  ;;  %vm1725_vm3 = vweird.f32 %v1718_v39 }
 0x323   : > { %v1853_v40 = vpop.eup %1852 }
 0x324   : > { %v1720_v41 = vmul.f32 %v1853_v40, %v1718_v39  ;;  %vm1726_vm4 = vweird.f32 %v1853_v40 }
 0x325   : > { %vm1727_vm5 = vmor %vm1725_vm3, %vm1726_vm4 }
 0x326   : > { %v1721_v42 = vmul.f32 %v1853_v40, %v1720_v41 }
 0x328   : > { %v1722_v43 = vmul.f32 0.5, %v1721_v42 }
 0x32a   : > { %v1723_v47 = vsub.f32 1.5, %v1722_v43 }
 0x32c   : > { %v1724_v45 = vmul.f32 %v1853_v40, %v1723_v47 }
 0x32e   : > { %v1728_v46 = vsel %vm1727_vm5, %v1853_v40, %v1724_v45 }
 0x32f   : > { %v1729_v49 = vmul.f32 %v1728_v46, %v1717_v44 }
 0x331   : > { %v1731_v48 = vmul.f32 %v1729_v49, %v1712_v34  ;;  %1733 = vst.msk [vmem:[%s3019_s6] sm:$0xf] %vm1695_vm2, %v1729_v49 }
 0x333   : > { %v1732_v24 = vsub.f32 %v1730_v50, %v1731_v48 }
 0x335   : > { %1735 = vrot.lane.b32.xlu0 %v1732_v24, %s1880_s17 }
 0x3a7   : > { %v1736_v51 = vpop.permute.xlu0 %1735 }
 0x3a8   : > { %1739 = vst.msk [vmem:[%s3019_s6] sm:$0xf] %vm1738_vm6, %v1736_v51 }
 0x3a9 PF: > { %p14_p11 = scmp.ge.s32.totalorder %s1935_s25, 4   ;;  %s3020_s21 = smov %s1872_s22 }
 0x3aa   : > { %s3021_s22 = smov %s1944_s28  ;;  %s3022_s23 = smov %s1935_s25 }
 0x3ab   :  { %16 = sbr.rel (!%p14_p11) target bundleno = 2 (0x2), region = 117 }

// kernel: block_forward.7
= control target key start
LH: loop header
LB: loop body
LE: loop exit
PB: predicated region body
PF: predicated region fallthrough
CT: control target
= control target key end

     0   :  { %s346_s12 = smov 0   ;;  %s369_s0 = inlined_call_operand.vmem [shape: f32[4,512], index: 0, kind: input, shape index: {}]   ;;  %s370_s1 = inlined_call_operand.vmem [shape: f32[4,2], index: 1, kind: input, shape index: {}]   ;;  %s371_s2 = inlined_call_operand.vmem [shape: f32[4,512], index: 2, kind: input, shape index: {}]   ;;  %s372_s3 = inlined_call_operand.vmem [shape: f32[4,512], index: 3, kind: output, shape index: {}]  }
   0x1 LB: > { %s289_s13 = sadd.s32 4294967295, %s321_s12   ;;  %p293_p0 = scmp.ge.s32.totalorder %s321_s12, 1  ;;  %s321_s12 = sphi %s346_s12, %s13_s12  }
   0x2   : > { %p149_p1 = scmp.lt.s32.totalorder %s321_s12, 3 }
   0x4   : > { %p150_p2 = pnand %p293_p0, %p149_p1 }
   0x5   : > { %s294_s16 = sshll.u32 (!%p150_p2), %s289_s13, 1 }
   0x6   : > { %153 = sbr.rel (%p150_p2) target bundleno = 146 (0x92), region = 32  ;;  %p179_p3 = scmp.lt.s32.totalorder (!%p150_p2), %s294_s16, 3 }
   0xb   : > { %v197_v0 = vld [vmem:[%s370_s1] sm:$0xf]  ;;  %v323_v1 = vmov 0   ;;  %v324_v2 = vmov 1   ;;  %s374_s16 = smov (!%p179_p3, %s294_s16), 3 }
   0xc   : > { %313 = vset.pattern.permute.xlu0 %v323_v1  ;;  %v325_v3 = vmov 839922192   ;;  %s295_s17 = sshll.u32 %s374_s16, 2 }
   0xd   : > { %200 = vperm.xlu0 %313, %v197_v0   ;;  %v203_v4 = vunpack.c.l.s4 %v325_v3  ;;  %s182_s20 = scalar_lea.vmem %s369_s0, %s295_s17  ;;  %s188_s23 = scalar_lea.vmem %s371_s2, %s295_s17 }
   0xe   : > { %v196_v8 = vld [vmem:[%s182_s20] sm:$0xff]  ;;  %s194_s26 = scalar_lea.vmem %s372_s3, %s295_s17 }
   0xf   : > { %v204_v6 = vunpack.c.0.s8 %v203_v4  ;;  %v217_v12 = vld [vmem:[%s188_s23] sm:$0xff] }
  0x15   : > { %314 = vset.pattern.permute.xlu0 %v324_v2 }
  0x16   : > { %209 = vperm.xlu0 %314, %v197_v0  }
  0x7f   : > { %v201_v5 = vpop.permute.xlu0 %200 }
  0x80   : > { %v205_v7 = vperm.slane %v201_v5, %v204_v6 }
  0x82   : > { %v207_v10 = vmul.f32 %v205_v7, %v196_v8 }
  0x88   : > { %v210_v9 = vpop.permute.xlu0 %209 }
  0x89   : > { %v214_v11 = vperm.slane %v210_v9, %v204_v6 }
  0x8b   : > { %v216_v13 = vadd.f32 %v214_v11, %v207_v10 }
  0x8d   : > { %v218_v14 = vadd.f32 %v217_v12, %v216_v13 }
  0x8f   : > { %v219_v15 = vmax.f32 %v218_v14, 0.0 }
  0x91   : > { %220 = vst [vmem:[%s194_s26] sm:$0xff] %v219_v15 }
  0x92 PF: > { %s13_s12 = sadd.s32 1, %s321_s12  }
  0x93   : > { %p10_p4 = scmp.ge.s32.totalorder %s13_s12, 4  }
  0x95   :  { %12 = sbr.rel (!%p10_p4) target bundleno = 1 (0x1), region = 65 }

</bundles_post_ra>
